<compile_context>
chip_gen: v7x
topology: tpu7x:2x2x1
jax: 0.10.0
libtpu: 0.0.40
codegen_flags: <defaults>
</compile_context>

<pallas_src>
import math

import jax
import jax.numpy as jnp
from jax.experimental import pallas as pl
from jax.experimental.pallas import tpu as pltpu


# ----------------------------- wrapper-side weight prep -----------------------------
def _band_toeplitz(wk, W):
    """wk: (3, 3, Ci, Co) conv taps (tap (ku,kv) multiplies x[i+ku-1, j+kv-1, :]).

    Returns T: (3, W*Ci, W*Co) with
        T[ku, j'*Ci+ci, j*Co+co] = wk[ku, j'-j+1, ci, co]   (zero outside |j'-j|<=1)
    so that, with x the lane-dense (H, W*Ci) slab,
        y[i, :] = x[i-1, :] @ T[0] + x[i, :] @ T[1] + x[i+1, :] @ T[2]
    is the 3x3 'same' conv with zero padding (row shifts handled in-kernel).
    """
    d = jnp.arange(W)[:, None] - jnp.arange(W)[None, :]                 # j' - j
    sel = (d[None, :, :] == (jnp.arange(3) - 1)[:, None, None])         # (3, W, W)
    sel = sel.astype(wk.dtype)
    t = jnp.einsum('vpq,uvio->upiqo', sel, wk)                          # (3, W, Ci, W, Co)
    Ci, Co = wk.shape[2], wk.shape[3]
    return t.reshape(3, W * Ci, W * Co)


def _band_toeplitz_up(w3, W):
    """w3: (Cmid, Cout, 4, 4) ConvTranspose2d(4, stride=2, pad=1) weight.

    Returns U: (3, W*Cmid, 4*W*Cout) such that, with h the lane-dense (H, W*Cmid)
    slab and row-shifted copies h_{r}[i] = h[i + r - 1] (zeros out of range),
        Y = h_0 @ U[0] + h_1 @ U[1] + h_2 @ U[2]          # (H, 4*W*Cout)
    holds the four parity planes of the 2x-upsampled output:
        y_full[2i+a, 2j+b, co] = Y[i, (2a+b)*W*Cout + j*Cout + co]
    """
    Cmid, Cout = w3.shape[0], w3.shape[1]
    d = jnp.arange(W)[:, None] - jnp.arange(W)[None, :]                 # j' - j
    blocks = []
    for r in range(3):
        cols = []
        for a in range(2):
            for b in range(2):
                da = r - a
                if da not in (0, 1):
                    cols.append(jnp.zeros((W * Cmid, W * Cout), w3.dtype))
                    continue
                acc = jnp.zeros((W, Cmid, W, Cout), w3.dtype)
                for db in range(2):
                    sel = (d == (b + db - 1)).astype(w3.dtype)          # j'-j == b+db-1
                    acc = acc + jnp.einsum(
                        'pq,io->piqo', sel, w3[:, :, 3 - a - 2 * da, 3 - b - 2 * db])
                cols.append(acc.reshape(W * Cmid, W * Cout))
        blocks.append(jnp.concatenate(cols, axis=1))                    # (W*Cmid, 4*W*Cout)
    return jnp.stack(blocks, axis=0)


# ----------------------------------- kernel -----------------------------------
def _unet_up_kernel(x_ref, t1_ref, b1_ref, t2_ref, b2_ref, u3_ref, p_ref, out_ref):
    """Fused UNetUp for one batch element (grid axis = batch), lane-dense layout.

    x_ref  : (1, H, W*Cin)           concatenated [x, skip] slab
    t1_ref : (3, W*Cin,  W*Cmid)     block-Toeplitz weights of ConvT(3,1,1) #1
    b1_ref : (1, W*Cmid)             bias tiled to lane layout
    t2_ref : (3, W*Cmid, W*Cmid)     ConvT(3,1,1) #2
    b2_ref : (1, W*Cmid)
    u3_ref : (3, W*Cmid, 4*W*Cout)   ConvT(4,2,1) parity-plane weights
    p_ref  : (4*W*Cout, W*Cout)      channel-match matrix / (4*H*W)
    out_ref: (1, 4, H, W*Cout)       parity planes, lane-dense
    """
    H = x_ref.shape[1]
    WCout = out_ref.shape[3]

    # Row-shift matrices built once per step: (s_dn @ x)[i] = x[i-1] (row 0 -> 0),
    # (s_up @ x)[i] = x[i+1] (last row -> 0).  Tiny (H,H) dots on the idle MXU;
    # no padded scratch slab, no halo writes.
    ri = jax.lax.broadcasted_iota(jnp.int32, (H, H), 0)
    ci = jax.lax.broadcasted_iota(jnp.int32, (H, H), 1)
    s_dn = (ci == ri - 1).astype(jnp.float32)
    s_up = (ci == ri + 1).astype(jnp.float32)

    def band_conv(x, t_ref, bias):
        # y[i, :] = x[i-1,:] @ T0 + x[i,:] @ T1 + x[i+1,:] @ T2  (+ bias)
        x_dn = jnp.dot(s_dn, x, preferred_element_type=jnp.float32)
        x_up = jnp.dot(s_up, x, preferred_element_type=jnp.float32)
        acc = jnp.dot(x_dn, t_ref[0], preferred_element_type=jnp.float32)
        acc = acc + jnp.dot(x, t_ref[1], preferred_element_type=jnp.float32)
        acc = acc + jnp.dot(x_up, t_ref[2], preferred_element_type=jnp.float32)
        if bias is not None:
            acc = acc + bias
        return acc

    x = x_ref[0]                                          # (H, W*Cin)
    h1 = band_conv(x, t1_ref, b1_ref[...])                # (H, W*Cmid)
    h2 = band_conv(h1, t2_ref, b2_ref[...])               # (H, W*Cmid)
    y = band_conv(h2, u3_ref, None)                       # (H, 4*W*Cout) parity planes

    # InstanceNorm2d over the full 2H x 2W extent per channel (biased var, eps 1e-5).
    # Row-sum (sublane reduce) then a channel-match matmul that both reduces over
    # the 4*W column positions per channel and broadcasts the stat back to the
    # lane-dense (1, W*Cout) pattern.
    s = jnp.sum(y, axis=0, keepdims=True)                 # (1, 4*W*Cout)
    ss = jnp.sum(y * y, axis=0, keepdims=True)
    mean = jnp.dot(s, p_ref[...], preferred_element_type=jnp.float32)   # (1, W*Cout)
    ex2 = jnp.dot(ss, p_ref[...], preferred_element_type=jnp.float32)
    var = jnp.maximum(ex2 - mean * mean, 0.0)
    inv = jax.lax.rsqrt(var + 1e-5)

    # Normalize + LeakyReLU(0.2) + lane-dense store, one pass per parity plane.
    for p in range(4):
        z = (y[:, p * WCout:(p + 1) * WCout] - mean) * inv
        out_ref[0, p] = jnp.where(z > 0, z, 0.2 * z)


# ----------------------------------- wrapper -----------------------------------
def unet_up_forward(x, skip, params):
    """UNetUp forward.  x, skip: NCHW float32 (like the PyTorch module)."""
    N, _, H, W = x.shape
    xc = jnp.concatenate([x, skip], axis=1)                         # NCHW concat
    Cin = xc.shape[1]
    # Lane-dense input slab: (N, H, W*Cin)   (W*Cin = 128 at these sizes)
    x_lane = jnp.transpose(xc, (0, 2, 3, 1)).reshape(N, H, W * Cin).astype(jnp.float32)

    w1, b1 = params["w1"], params["b1"]                             # (Cin, Cmid, 3, 3), (Cmid,)
    w2, b2 = params["w2"], params["b2"]                             # (Cmid, Cmid, 3, 3), (Cmid,)
    w3 = params["w3"]                                               # (Cmid, Cout, 4, 4)
    Cmid, Cout = w1.shape[1], w3.shape[1]

    # ConvTranspose(k=3,s=1,p=1) == conv(pad=1) with spatially flipped kernel,
    # in/out channels swapped -> taps layout (ku, kv, cin, cout).
    w1k = jnp.transpose(w1[:, :, ::-1, ::-1], (2, 3, 0, 1)).astype(jnp.float32)
    w2k = jnp.transpose(w2[:, :, ::-1, ::-1], (2, 3, 0, 1)).astype(jnp.float32)

    t1 = _band_toeplitz(w1k, W)                                     # (3, W*Cin,  W*Cmid)
    t2 = _band_toeplitz(w2k, W)                                     # (3, W*Cmid, W*Cmid)
    u3 = _band_toeplitz_up(w3.astype(jnp.float32), W)               # (3, W*Cmid, 4*W*Cout)
    b1l = jnp.tile(b1.astype(jnp.float32), W).reshape(1, W * Cmid)
    b2l = jnp.tile(b2.astype(jnp.float32), W).reshape(1, W * Cmid)

    # Channel-match reduce+broadcast matrix for InstanceNorm.
    m = jnp.arange(4 * W * Cout)[:, None] % Cout
    n_ = jnp.arange(W * Cout)[None, :] % Cout
    pmat = (m == n_).astype(jnp.float32) / (4.0 * H * W)

    grid_spec = pltpu.PrefetchScalarGridSpec(
        num_scalar_prefetch=0,
        grid=(N,),
        in_specs=[
            pl.BlockSpec((1, H, W * Cin), lambda n: (n, 0, 0)),
            pl.BlockSpec((3, W * Cin, W * Cmid), lambda n: (0, 0, 0)),
            pl.BlockSpec((1, W * Cmid), lambda n: (0, 0)),
            pl.BlockSpec((3, W * Cmid, W * Cmid), lambda n: (0, 0, 0)),
            pl.BlockSpec((1, W * Cmid), lambda n: (0, 0)),
            pl.BlockSpec((3, W * Cmid, 4 * W * Cout), lambda n: (0, 0, 0)),
            pl.BlockSpec((4 * W * Cout, W * Cout), lambda n: (0, 0)),
        ],
        out_specs=pl.BlockSpec((1, 4, H, W * Cout), lambda n: (n, 0, 0, 0)),
    )

    out = pl.pallas_call(
        _unet_up_kernel,
        out_shape=jax.ShapeDtypeStruct((N, 4, H, W * Cout), jnp.float32),
        grid_spec=grid_spec,
        compiler_params=pltpu.CompilerParams(
            dimension_semantics=("parallel",)),
    )(x_lane, t1, b1l, t2, b2l, u3, pmat)

    # Re-interleave parity planes: out[n, 2a+b, i, j*Cout+c] = y[n, 2i+a, 2j+b, c]
    y = out.reshape(N, 2, 2, H, W, Cout)
    y = jnp.transpose(y, (0, 3, 1, 4, 2, 5)).reshape(N, 2 * H, 2 * W, Cout)
    return jnp.transpose(y, (0, 3, 1, 2))                           # back to NCHW


# ----------------------------- pure-JAX reference -----------------------------
def _conv_transpose2d_ref(x, w, b, stride, padding):
    k = w.shape[2]
    w_conv = jnp.transpose(w[:, :, ::-1, ::-1], (1, 0, 2, 3))       # OIHW
    y = jax.lax.conv_general_dilated(
        x, w_conv, window_strides=(1, 1),
        padding=[(k - 1 - padding, k - 1 - padding)] * 2,
        lhs_dilation=(stride, stride),
        dimension_numbers=("NCHW", "OIHW", "NCHW"))
    if b is not None:
        y = y + b[None, :, None, None]
    return y


def unet_up_reference(x, skip, params):
    h = jnp.concatenate([x, skip], axis=1)
    h = _conv_transpose2d_ref(h, params["w1"], params["b1"], 1, 1)
    h = _conv_transpose2d_ref(h, params["w2"], params["b2"], 1, 1)
    h = _conv_transpose2d_ref(h, params["w3"], None, 2, 1)
    mean = h.mean(axis=(2, 3), keepdims=True)
    var = ((h - mean) ** 2).mean(axis=(2, 3), keepdims=True)
    h = (h - mean) * jax.lax.rsqrt(var + 1e-5)
    return jnp.where(h > 0, h, 0.2 * h)


if __name__ == "__main__":
    N, Cx, Cs, H, W = 2, 4, 4, 16, 16
    in_size = Cx + Cs            # 8 (channels after concat)
    mid_size = in_size // 2      # 4
    out_size = 8

    key = jax.random.PRNGKey(0)
    kx, ks, k1, k2, k3, k4, k5 = jax.random.split(key, 7)
    x = jax.random.normal(kx, (N, Cx, H, W), jnp.float32)
    skip = jax.random.normal(ks, (N, Cs, H, W), jnp.float32)

    params = {
        "w1": jax.random.normal(k1, (in_size, mid_size, 3, 3), jnp.float32)
              * (1.0 / math.sqrt(in_size * 9)),
        "b1": jax.random.normal(k2, (mid_size,), jnp.float32) * 0.1,
        "w2": jax.random.normal(k3, (mid_size, mid_size, 3, 3), jnp.float32)
              * (1.0 / math.sqrt(mid_size * 9)),
        "b2": jax.random.normal(k4, (mid_size,), jnp.float32) * 0.1,
        "w3": jax.random.normal(k5, (mid_size, out_size, 4, 4), jnp.float32)
              * (1.0 / math.sqrt(mid_size * 16)),
    }
    # TODO(synk): nn.Dropout branch is only added when dropout is not None; this
    # instance mirrors the default (dropout=None), so no dropout is applied.

    y = unet_up_forward(x, skip, params)
    y = jax.block_until_ready(y)

    y_ref = unet_up_reference(x, skip, params)
    assert y.shape == (N, out_size, 2 * H, 2 * W), y.shape
    err = float(jnp.max(jnp.abs(y - y_ref)))
    assert err < 5e-3, f"max abs err {err}"
    print("KERNEL_OK")
</pallas_src>

<mosaic_0001>
module attributes {stable_mosaic.version = 11 : i64} {
  func.func @_unet_up_kernel(%arg0: i32, %arg1: memref<1x16x128xf32, #tpu.memory_space<vmem>>, %arg2: memref<3x128x64xf32, #tpu.memory_space<vmem>>, %arg3: memref<1x64xf32, #tpu.memory_space<vmem>>, %arg4: memref<3x64x64xf32, #tpu.memory_space<vmem>>, %arg5: memref<1x64xf32, #tpu.memory_space<vmem>>, %arg6: memref<3x64x512xf32, #tpu.memory_space<vmem>>, %arg7: memref<512x128xf32, #tpu.memory_space<vmem>>, %arg8: memref<1x4x16x128xf32, #tpu.memory_space<vmem>>) attributes {dimension_semantics = [#tpu.dimension_semantics<parallel>], iteration_bounds = array<i64: 2>, scalar_prefetch = 0 : i64, scratch_operands = 0 : i64, tpu.core_type = #tpu.core_type<tc>, window_params = [{transform_indices = @transform_0, window_bounds = array<i64: 1, 16, 128>}, {pipeline_mode = #tpu.pipeline_mode<synchronous>, transform_indices = @transform_1, window_bounds = array<i64: 3, 128, 64>}, {pipeline_mode = #tpu.pipeline_mode<synchronous>, transform_indices = @transform_2, window_bounds = array<i64: 1, 64>}, {pipeline_mode = #tpu.pipeline_mode<synchronous>, transform_indices = @transform_3, window_bounds = array<i64: 3, 64, 64>}, {pipeline_mode = #tpu.pipeline_mode<synchronous>, transform_indices = @transform_4, window_bounds = array<i64: 1, 64>}, {pipeline_mode = #tpu.pipeline_mode<synchronous>, transform_indices = @transform_5, window_bounds = array<i64: 3, 64, 512>}, {pipeline_mode = #tpu.pipeline_mode<synchronous>, transform_indices = @transform_6, window_bounds = array<i64: 512, 128>}, {transform_indices = @transform_7, window_bounds = array<i64: 1, 4, 16, 128>}]} {
    %0 = tpu.iota {dimensions = array<i32: 0>} : vector<16x16xi32>
    %1 = tpu.iota {dimensions = array<i32: 1>} : vector<16x16xi32>
    %c1_i32 = arith.constant 1 : i32
    %2 = vector.broadcast %c1_i32 : i32 to vector<16x16xi32>
    %3 = arith.subi %0, %2 : vector<16x16xi32>
    %4 = arith.cmpi eq, %1, %3 : vector<16x16xi32>
    %5 = arith.extui %4 : vector<16x16xi1> to vector<16x16xi32>
    %6 = arith.sitofp %5 : vector<16x16xi32> to vector<16x16xf32>
    %c1_i32_0 = arith.constant 1 : i32
    %7 = vector.broadcast %c1_i32_0 : i32 to vector<16x16xi32>
    %8 = arith.addi %0, %7 : vector<16x16xi32>
    %9 = arith.cmpi eq, %1, %8 : vector<16x16xi32>
    %10 = arith.extui %9 : vector<16x16xi1> to vector<16x16xi32>
    %11 = arith.sitofp %10 : vector<16x16xi32> to vector<16x16xf32>
    %c0 = arith.constant 0 : index
    %c0_1 = arith.constant 0 : index
    %c0_2 = arith.constant 0 : index
    %12 = vector.load %arg1[%c0, %c0_1, %c0_2] : memref<1x16x128xf32, #tpu.memory_space<vmem>>, vector<1x16x128xf32>
    %13 = vector.shape_cast %12 : vector<1x16x128xf32> to vector<16x128xf32>
    %c0_3 = arith.constant 0 : index
    %c0_4 = arith.constant 0 : index
    %14 = vector.load %arg3[%c0_3, %c0_4] : memref<1x64xf32, #tpu.memory_space<vmem>>, vector<1x64xf32>
    %cst = arith.constant dense<0.000000e+00> : vector<16x128xf32>
    %15 = tpu.matmul %6, %13, %cst {dimension_numbers = #tpu.dot_dimension_numbers<[1], [0], [0], [1], [0, 0, 1, 1], [], []>} : vector<16x16xf32>, vector<16x128xf32>, vector<16x128xf32> -> vector<16x128xf32>
    %cst_5 = arith.constant dense<0.000000e+00> : vector<16x128xf32>
    %16 = tpu.matmul %11, %13, %cst_5 {dimension_numbers = #tpu.dot_dimension_numbers<[1], [0], [0], [1], [0, 0, 1, 1], [], []>} : vector<16x16xf32>, vector<16x128xf32>, vector<16x128xf32> -> vector<16x128xf32>
    %c0_6 = arith.constant 0 : index
    %c0_7 = arith.constant 0 : index
    %c0_8 = arith.constant 0 : index
    %17 = vector.load %arg2[%c0_6, %c0_7, %c0_8] : memref<3x128x64xf32, #tpu.memory_space<vmem>>, vector<1x128x64xf32>
    %18 = vector.shape_cast %17 : vector<1x128x64xf32> to vector<128x64xf32>
    %cst_9 = arith.constant dense<0.000000e+00> : vector<16x64xf32>
    %19 = tpu.matmul %15, %18, %cst_9 {dimension_numbers = #tpu.dot_dimension_numbers<[1], [0], [0], [1], [0, 0, 1, 1], [], []>} : vector<16x128xf32>, vector<128x64xf32>, vector<16x64xf32> -> vector<16x64xf32>
    %c1 = arith.constant 1 : index
    %c0_10 = arith.constant 0 : index
    %c0_11 = arith.constant 0 : index
    %20 = vector.load %arg2[%c1, %c0_10, %c0_11] : memref<3x128x64xf32, #tpu.memory_space<vmem>>, vector<1x128x64xf32>
    %21 = vector.shape_cast %20 : vector<1x128x64xf32> to vector<128x64xf32>
    %cst_12 = arith.constant dense<0.000000e+00> : vector<16x64xf32>
    %22 = tpu.matmul %13, %21, %cst_12 {dimension_numbers = #tpu.dot_dimension_numbers<[1], [0], [0], [1], [0, 0, 1, 1], [], []>} : vector<16x128xf32>, vector<128x64xf32>, vector<16x64xf32> -> vector<16x64xf32>
    %23 = arith.addf %19, %22 : vector<16x64xf32>
    %c2 = arith.constant 2 : index
    %c0_13 = arith.constant 0 : index
    %c0_14 = arith.constant 0 : index
    %24 = vector.load %arg2[%c2, %c0_13, %c0_14] : memref<3x128x64xf32, #tpu.memory_space<vmem>>, vector<1x128x64xf32>
    %25 = vector.shape_cast %24 : vector<1x128x64xf32> to vector<128x64xf32>
    %cst_15 = arith.constant dense<0.000000e+00> : vector<16x64xf32>
    %26 = tpu.matmul %16, %25, %cst_15 {dimension_numbers = #tpu.dot_dimension_numbers<[1], [0], [0], [1], [0, 0, 1, 1], [], []>} : vector<16x128xf32>, vector<128x64xf32>, vector<16x64xf32> -> vector<16x64xf32>
    %27 = arith.addf %23, %26 : vector<16x64xf32>
    %28 = vector.broadcast %14 : vector<1x64xf32> to vector<16x64xf32>
    %29 = arith.addf %27, %28 : vector<16x64xf32>
    %c0_16 = arith.constant 0 : index
    %c0_17 = arith.constant 0 : index
    %30 = vector.load %arg5[%c0_16, %c0_17] : memref<1x64xf32, #tpu.memory_space<vmem>>, vector<1x64xf32>
    %cst_18 = arith.constant dense<0.000000e+00> : vector<16x64xf32>
    %31 = tpu.matmul %6, %29, %cst_18 {dimension_numbers = #tpu.dot_dimension_numbers<[1], [0], [0], [1], [0, 0, 1, 1], [], []>} : vector<16x16xf32>, vector<16x64xf32>, vector<16x64xf32> -> vector<16x64xf32>
    %cst_19 = arith.constant dense<0.000000e+00> : vector<16x64xf32>
    %32 = tpu.matmul %11, %29, %cst_19 {dimension_numbers = #tpu.dot_dimension_numbers<[1], [0], [0], [1], [0, 0, 1, 1], [], []>} : vector<16x16xf32>, vector<16x64xf32>, vector<16x64xf32> -> vector<16x64xf32>
    %c0_20 = arith.constant 0 : index
    %c0_21 = arith.constant 0 : index
    %c0_22 = arith.constant 0 : index
    %33 = vector.load %arg4[%c0_20, %c0_21, %c0_22] : memref<3x64x64xf32, #tpu.memory_space<vmem>>, vector<1x64x64xf32>
    %34 = vector.shape_cast %33 : vector<1x64x64xf32> to vector<64x64xf32>
    %cst_23 = arith.constant dense<0.000000e+00> : vector<16x64xf32>
    %35 = tpu.matmul %31, %34, %cst_23 {dimension_numbers = #tpu.dot_dimension_numbers<[1], [0], [0], [1], [0, 0, 1, 1], [], []>} : vector<16x64xf32>, vector<64x64xf32>, vector<16x64xf32> -> vector<16x64xf32>
    %c1_24 = arith.constant 1 : index
    %c0_25 = arith.constant 0 : index
    %c0_26 = arith.constant 0 : index
    %36 = vector.load %arg4[%c1_24, %c0_25, %c0_26] : memref<3x64x64xf32, #tpu.memory_space<vmem>>, vector<1x64x64xf32>
    %37 = vector.shape_cast %36 : vector<1x64x64xf32> to vector<64x64xf32>
    %cst_27 = arith.constant dense<0.000000e+00> : vector<16x64xf32>
    %38 = tpu.matmul %29, %37, %cst_27 {dimension_numbers = #tpu.dot_dimension_numbers<[1], [0], [0], [1], [0, 0, 1, 1], [], []>} : vector<16x64xf32>, vector<64x64xf32>, vector<16x64xf32> -> vector<16x64xf32>
    %39 = arith.addf %35, %38 : vector<16x64xf32>
    %c2_28 = arith.constant 2 : index
    %c0_29 = arith.constant 0 : index
    %c0_30 = arith.constant 0 : index
    %40 = vector.load %arg4[%c2_28, %c0_29, %c0_30] : memref<3x64x64xf32, #tpu.memory_space<vmem>>, vector<1x64x64xf32>
    %41 = vector.shape_cast %40 : vector<1x64x64xf32> to vector<64x64xf32>
    %cst_31 = arith.constant dense<0.000000e+00> : vector<16x64xf32>
    %42 = tpu.matmul %32, %41, %cst_31 {dimension_numbers = #tpu.dot_dimension_numbers<[1], [0], [0], [1], [0, 0, 1, 1], [], []>} : vector<16x64xf32>, vector<64x64xf32>, vector<16x64xf32> -> vector<16x64xf32>
    %43 = arith.addf %39, %42 : vector<16x64xf32>
    %44 = vector.broadcast %30 : vector<1x64xf32> to vector<16x64xf32>
    %45 = arith.addf %43, %44 : vector<16x64xf32>
    %cst_32 = arith.constant dense<0.000000e+00> : vector<16x64xf32>
    %46 = tpu.matmul %6, %45, %cst_32 {dimension_numbers = #tpu.dot_dimension_numbers<[1], [0], [0], [1], [0, 0, 1, 1], [], []>} : vector<16x16xf32>, vector<16x64xf32>, vector<16x64xf32> -> vector<16x64xf32>
    %cst_33 = arith.constant dense<0.000000e+00> : vector<16x64xf32>
    %47 = tpu.matmul %11, %45, %cst_33 {dimension_numbers = #tpu.dot_dimension_numbers<[1], [0], [0], [1], [0, 0, 1, 1], [], []>} : vector<16x16xf32>, vector<16x64xf32>, vector<16x64xf32> -> vector<16x64xf32>
    %c0_34 = arith.constant 0 : index
    %c0_35 = arith.constant 0 : index
    %c0_36 = arith.constant 0 : index
    %48 = vector.load %arg6[%c0_34, %c0_35, %c0_36] : memref<3x64x512xf32, #tpu.memory_space<vmem>>, vector<1x64x512xf32>
    %49 = vector.shape_cast %48 : vector<1x64x512xf32> to vector<64x512xf32>
    %cst_37 = arith.constant dense<0.000000e+00> : vector<16x512xf32>
    %50 = tpu.matmul %46, %49, %cst_37 {dimension_numbers = #tpu.dot_dimension_numbers<[1], [0], [0], [1], [0, 0, 1, 1], [], []>} : vector<16x64xf32>, vector<64x512xf32>, vector<16x512xf32> -> vector<16x512xf32>
    %c1_38 = arith.constant 1 : index
    %c0_39 = arith.constant 0 : index
    %c0_40 = arith.constant 0 : index
    %51 = vector.load %arg6[%c1_38, %c0_39, %c0_40] : memref<3x64x512xf32, #tpu.memory_space<vmem>>, vector<1x64x512xf32>
    %52 = vector.shape_cast %51 : vector<1x64x512xf32> to vector<64x512xf32>
    %cst_41 = arith.constant dense<0.000000e+00> : vector<16x512xf32>
    %53 = tpu.matmul %45, %52, %cst_41 {dimension_numbers = #tpu.dot_dimension_numbers<[1], [0], [0], [1], [0, 0, 1, 1], [], []>} : vector<16x64xf32>, vector<64x512xf32>, vector<16x512xf32> -> vector<16x512xf32>
    %54 = arith.addf %50, %53 : vector<16x512xf32>
    %c2_42 = arith.constant 2 : index
    %c0_43 = arith.constant 0 : index
    %c0_44 = arith.constant 0 : index
    %55 = vector.load %arg6[%c2_42, %c0_43, %c0_44] : memref<3x64x512xf32, #tpu.memory_space<vmem>>, vector<1x64x512xf32>
    %56 = vector.shape_cast %55 : vector<1x64x512xf32> to vector<64x512xf32>
    %cst_45 = arith.constant dense<0.000000e+00> : vector<16x512xf32>
    %57 = tpu.matmul %47, %56, %cst_45 {dimension_numbers = #tpu.dot_dimension_numbers<[1], [0], [0], [1], [0, 0, 1, 1], [], []>} : vector<16x64xf32>, vector<64x512xf32>, vector<16x512xf32> -> vector<16x512xf32>
    %58 = arith.addf %54, %57 : vector<16x512xf32>
    %cst_46 = arith.constant dense<0.000000e+00> : vector<512xf32>
    %59 = vector.multi_reduction <add>, %58, %cst_46 [0] : vector<16x512xf32> to vector<512xf32>
    %60 = vector.shape_cast %59 : vector<512xf32> to vector<1x512xf32>
    %61 = arith.mulf %58, %58 : vector<16x512xf32>
    %cst_47 = arith.constant dense<0.000000e+00> : vector<512xf32>
    %62 = vector.multi_reduction <add>, %61, %cst_47 [0] : vector<16x512xf32> to vector<512xf32>
    %63 = vector.shape_cast %62 : vector<512xf32> to vector<1x512xf32>
    %c0_48 = arith.constant 0 : index
    %c0_49 = arith.constant 0 : index
    %64 = vector.load %arg7[%c0_48, %c0_49] : memref<512x128xf32, #tpu.memory_space<vmem>>, vector<512x128xf32>
    %cst_50 = arith.constant dense<0.000000e+00> : vector<1x128xf32>
    %65 = tpu.matmul %60, %64, %cst_50 {dimension_numbers = #tpu.dot_dimension_numbers<[1], [0], [0], [1], [0, 0, 1, 1], [], []>} : vector<1x512xf32>, vector<512x128xf32>, vector<1x128xf32> -> vector<1x128xf32>
    %c0_51 = arith.constant 0 : index
    %c0_52 = arith.constant 0 : index
    %66 = vector.load %arg7[%c0_51, %c0_52] : memref<512x128xf32, #tpu.memory_space<vmem>>, vector<512x128xf32>
    %cst_53 = arith.constant dense<0.000000e+00> : vector<1x128xf32>
    %67 = tpu.matmul %63, %66, %cst_53 {dimension_numbers = #tpu.dot_dimension_numbers<[1], [0], [0], [1], [0, 0, 1, 1], [], []>} : vector<1x512xf32>, vector<512x128xf32>, vector<1x128xf32> -> vector<1x128xf32>
    %68 = arith.mulf %65, %65 : vector<1x128xf32>
    %69 = arith.subf %67, %68 : vector<1x128xf32>
    %cst_54 = arith.constant 0.000000e+00 : f32
    %70 = vector.broadcast %cst_54 : f32 to vector<1x128xf32>
    %71 = arith.maximumf %69, %70 : vector<1x128xf32>
    %cst_55 = arith.constant 9.99999974E-6 : f32
    %72 = vector.broadcast %cst_55 : f32 to vector<1x128xf32>
    %73 = arith.addf %71, %72 : vector<1x128xf32>
    %74 = math.rsqrt %73 : vector<1x128xf32>
    %75 = vector.extract_strided_slice %58 {offsets = [0, 0], sizes = [16, 128], strides = [1, 1]} : vector<16x512xf32> to vector<16x128xf32>
    %76 = vector.broadcast %65 : vector<1x128xf32> to vector<16x128xf32>
    %77 = arith.subf %75, %76 : vector<16x128xf32>
    %78 = vector.broadcast %74 : vector<1x128xf32> to vector<16x128xf32>
    %79 = arith.mulf %77, %78 : vector<16x128xf32>
    %cst_56 = arith.constant 0.000000e+00 : f32
    %80 = vector.broadcast %cst_56 : f32 to vector<16x128xf32>
    %81 = arith.cmpf ogt, %79, %80 : vector<16x128xf32>
    %cst_57 = arith.constant 2.000000e-01 : f32
    %82 = vector.broadcast %cst_57 : f32 to vector<16x128xf32>
    %83 = arith.mulf %82, %79 : vector<16x128xf32>
    %84 = arith.select %81, %79, %83 : vector<16x128xi1>, vector<16x128xf32>
    %c0_58 = arith.constant 0 : index
    %c0_59 = arith.constant 0 : index
    %c0_60 = arith.constant 0 : index
    %c0_61 = arith.constant 0 : index
    %85 = vector.load %arg8[%c0_58, %c0_59, %c0_60, %c0_61] : memref<1x4x16x128xf32, #tpu.memory_space<vmem>>, vector<1x1x16x128xf32>
    %86 = vector.shape_cast %85 : vector<1x1x16x128xf32> to vector<16x128xf32>
    %87 = vector.shape_cast %84 : vector<16x128xf32> to vector<1x1x16x128xf32>
    tpu.vector_store %arg8[%c0_58, %c0_59, %c0_60, %c0_61], %87 {strides = array<i32>} : memref<1x4x16x128xf32, #tpu.memory_space<vmem>>, vector<1x1x16x128xf32>,
    %88 = vector.extract_strided_slice %58 {offsets = [0, 128], sizes = [16, 128], strides = [1, 1]} : vector<16x512xf32> to vector<16x128xf32>
    %89 = vector.broadcast %65 : vector<1x128xf32> to vector<16x128xf32>
    %90 = arith.subf %88, %89 : vector<16x128xf32>
    %91 = vector.broadcast %74 : vector<1x128xf32> to vector<16x128xf32>
    %92 = arith.mulf %90, %91 : vector<16x128xf32>
    %cst_62 = arith.constant 0.000000e+00 : f32
    %93 = vector.broadcast %cst_62 : f32 to vector<16x128xf32>
    %94 = arith.cmpf ogt, %92, %93 : vector<16x128xf32>
    %cst_63 = arith.constant 2.000000e-01 : f32
    %95 = vector.broadcast %cst_63 : f32 to vector<16x128xf32>
    %96 = arith.mulf %95, %92 : vector<16x128xf32>
    %97 = arith.select %94, %92, %96 : vector<16x128xi1>, vector<16x128xf32>
    %c0_64 = arith.constant 0 : index
    %c1_65 = arith.constant 1 : index
    %c0_66 = arith.constant 0 : index
    %c0_67 = arith.constant 0 : index
    %98 = vector.load %arg8[%c0_64, %c1_65, %c0_66, %c0_67] : memref<1x4x16x128xf32, #tpu.memory_space<vmem>>, vector<1x1x16x128xf32>
    %99 = vector.shape_cast %98 : vector<1x1x16x128xf32> to vector<16x128xf32>
    %100 = vector.shape_cast %97 : vector<16x128xf32> to vector<1x1x16x128xf32>
    tpu.vector_store %arg8[%c0_64, %c1_65, %c0_66, %c0_67], %100 {strides = array<i32>} : memref<1x4x16x128xf32, #tpu.memory_space<vmem>>, vector<1x1x16x128xf32>,
    %101 = vector.extract_strided_slice %58 {offsets = [0, 256], sizes = [16, 128], strides = [1, 1]} : vector<16x512xf32> to vector<16x128xf32>
    %102 = vector.broadcast %65 : vector<1x128xf32> to vector<16x128xf32>
    %103 = arith.subf %101, %102 : vector<16x128xf32>
    %104 = vector.broadcast %74 : vector<1x128xf32> to vector<16x128xf32>
    %105 = arith.mulf %103, %104 : vector<16x128xf32>
    %cst_68 = arith.constant 0.000000e+00 : f32
    %106 = vector.broadcast %cst_68 : f32 to vector<16x128xf32>
    %107 = arith.cmpf ogt, %105, %106 : vector<16x128xf32>
    %cst_69 = arith.constant 2.000000e-01 : f32
    %108 = vector.broadcast %cst_69 : f32 to vector<16x128xf32>
    %109 = arith.mulf %108, %105 : vector<16x128xf32>
    %110 = arith.select %107, %105, %109 : vector<16x128xi1>, vector<16x128xf32>
    %c0_70 = arith.constant 0 : index
    %c2_71 = arith.constant 2 : index
    %c0_72 = arith.constant 0 : index
    %c0_73 = arith.constant 0 : index
    %111 = vector.load %arg8[%c0_70, %c2_71, %c0_72, %c0_73] : memref<1x4x16x128xf32, #tpu.memory_space<vmem>>, vector<1x1x16x128xf32>
    %112 = vector.shape_cast %111 : vector<1x1x16x128xf32> to vector<16x128xf32>
    %113 = vector.shape_cast %110 : vector<16x128xf32> to vector<1x1x16x128xf32>
    tpu.vector_store %arg8[%c0_70, %c2_71, %c0_72, %c0_73], %113 {strides = array<i32>} : memref<1x4x16x128xf32, #tpu.memory_space<vmem>>, vector<1x1x16x128xf32>,
    %114 = vector.extract_strided_slice %58 {offsets = [0, 384], sizes = [16, 128], strides = [1, 1]} : vector<16x512xf32> to vector<16x128xf32>
    %115 = vector.broadcast %65 : vector<1x128xf32> to vector<16x128xf32>
    %116 = arith.subf %114, %115 : vector<16x128xf32>
    %117 = vector.broadcast %74 : vector<1x128xf32> to vector<16x128xf32>
    %118 = arith.mulf %116, %117 : vector<16x128xf32>
    %cst_74 = arith.constant 0.000000e+00 : f32
    %119 = vector.broadcast %cst_74 : f32 to vector<16x128xf32>
    %120 = arith.cmpf ogt, %118, %119 : vector<16x128xf32>
    %cst_75 = arith.constant 2.000000e-01 : f32
    %121 = vector.broadcast %cst_75 : f32 to vector<16x128xf32>
    %122 = arith.mulf %121, %118 : vector<16x128xf32>
    %123 = arith.select %120, %118, %122 : vector<16x128xi1>, vector<16x128xf32>
    %c0_76 = arith.constant 0 : index
    %c3 = arith.constant 3 : index
    %c0_77 = arith.constant 0 : index
    %c0_78 = arith.constant 0 : index
    %124 = vector.load %arg8[%c0_76, %c3, %c0_77, %c0_78] : memref<1x4x16x128xf32, #tpu.memory_space<vmem>>, vector<1x1x16x128xf32>
    %125 = vector.shape_cast %124 : vector<1x1x16x128xf32> to vector<16x128xf32>
    %126 = vector.shape_cast %123 : vector<16x128xf32> to vector<1x1x16x128xf32>
    tpu.vector_store %arg8[%c0_76, %c3, %c0_77, %c0_78], %126 {strides = array<i32>} : memref<1x4x16x128xf32, #tpu.memory_space<vmem>>, vector<1x1x16x128xf32>,
    return
  }
  func.func @transform_0(%arg0: i32) -> (i32, i32, i32) {
    %c0_i32 = arith.constant 0 : i32
    %c0_i32_0 = arith.constant 0 : i32
    %c0_i32_1 = arith.constant 0 : i32
    return %arg0, %c0_i32, %c0_i32_0 : i32, i32, i32
  }
  func.func @transform_1(%arg0: i32) -> (i32, i32, i32) {
    %c0_i32 = arith.constant 0 : i32
    %c0_i32_0 = arith.constant 0 : i32
    %c0_i32_1 = arith.constant 0 : i32
    %c0_i32_2 = arith.constant 0 : i32
    return %c0_i32, %c0_i32_0, %c0_i32_1 : i32, i32, i32
  }
  func.func @transform_2(%arg0: i32) -> (i32, i32) {
    %c0_i32 = arith.constant 0 : i32
    %c0_i32_0 = arith.constant 0 : i32
    %c0_i32_1 = arith.constant 0 : i32
    return %c0_i32, %c0_i32_0 : i32, i32
  }
  func.func @transform_3(%arg0: i32) -> (i32, i32, i32) {
    %c0_i32 = arith.constant 0 : i32
    %c0_i32_0 = arith.constant 0 : i32
    %c0_i32_1 = arith.constant 0 : i32
    %c0_i32_2 = arith.constant 0 : i32
    return %c0_i32, %c0_i32_0, %c0_i32_1 : i32, i32, i32
  }
  func.func @transform_4(%arg0: i32) -> (i32, i32) {
    %c0_i32 = arith.constant 0 : i32
    %c0_i32_0 = arith.constant 0 : i32
    %c0_i32_1 = arith.constant 0 : i32
    return %c0_i32, %c0_i32_0 : i32, i32
  }
  func.func @transform_5(%arg0: i32) -> (i32, i32, i32) {
    %c0_i32 = arith.constant 0 : i32
    %c0_i32_0 = arith.constant 0 : i32
    %c0_i32_1 = arith.constant 0 : i32
    %c0_i32_2 = arith.constant 0 : i32
    return %c0_i32, %c0_i32_0, %c0_i32_1 : i32, i32, i32
  }
  func.func @transform_6(%arg0: i32) -> (i32, i32) {
    %c0_i32 = arith.constant 0 : i32
    %c0_i32_0 = arith.constant 0 : i32
    %c0_i32_1 = arith.constant 0 : i32
    return %c0_i32, %c0_i32_0 : i32, i32
  }
  func.func @transform_7(%arg0: i32) -> (i32, i32, i32, i32) {
    %c0_i32 = arith.constant 0 : i32
    %c0_i32_0 = arith.constant 0 : i32
    %c0_i32_1 = arith.constant 0 : i32
    %c0_i32_2 = arith.constant 0 : i32
    return %arg0, %c0_i32, %c0_i32_0, %c0_i32_1 : i32, i32, i32, i32
  }
}

</mosaic_0001>

<bundles_post_ra>
// kernel: tpu_custom_call.1
= control target key start
LH: loop header
LB: loop body
LE: loop exit
PB: predicated region body
PF: predicated region fallthrough
CT: control target
= control target key end

     0   :  { %12 = vsyncpa [#allocation3], 0  ;;  %s4527_s0 = inlined_call_operand.vmem [shape: f32[2,16,128], index: 0, kind: input, shape index: {}]   ;;  %s4528_s1 = inlined_call_operand.vmem [shape: f32[3,128,64], index: 1, kind: input, shape index: {}]   ;;  %s4529_s2 = inlined_call_operand.vmem [shape: f32[1,64], index: 2, kind: input, shape index: {}]   ;;  %s4530_s3 = inlined_call_operand.hbm [shape: f32[3,64,64], index: 3, kind: input, shape index: {}]   ;;  %s4531_s4 = inlined_call_operand.vmem [shape: f32[1,64], index: 4, kind: input, shape index: {}]   ;;  %s4532_s5 = inlined_call_operand.hbm [shape: f32[3,64,512], index: 5, kind: input, shape index: {}]   ;;  %s4533_s6 = inlined_call_operand.vmem [shape: f32[512,128], index: 6, kind: input, shape index: {}]   ;;  %s4534_s7 = inlined_call_operand.hbm [shape: f32[2,4,16,128], index: 7, kind: output, shape index: {}]  }
   0x1   :  { %13 = vsyncpa [#allocation6], 0 }
   0x2   :  { %14 = vsyncpa [#allocation4], 0 }
   0x3   :  { %16 = vsyncpa [#allocation4 + $0x1], 0  ;;  %s3725_s24 = smov 0   ;;  %s3727_s25 = smov 0  }
   0x4   :  { %s3729_s26 = smov 0   ;;  %s3731_s27 = smov 0  }
   0x5 LB: > { %s3746_s28 = sadd.s32 4294967295, %s3673_s27   ;;  %s2516_s29 = sadd.s32 4294967294, %s3673_s27   ;;  %s3673_s27 = sphi %s3731_s27, %s4554_s27   ;;  %s3669_s26 = sphi %s3729_s26, %s4553_s26   ;;  %s3665_s25 = sphi %s3727_s25, %s4552_s25   ;;  %s3661_s24 = sphi %s3725_s24, %s4551_s24  }
   0x6   : > { %s3750_s30 = sadd.s32 1, %s3673_s27   ;;  %s181_s8 = sadd.s32 1, %s3669_s26 }
   0x7   : > { %s178_s9 = ssub.s32 %s3673_s27, %s3750_s30  ;;  %p191_p0 = scmp.ne.s32.totalorder %s3669_s26, %s3665_s25 }
   0x8   : > { %p179_p1 = scmp.eq.s32.totalorder %s178_s9, 0  ;;  %p192_p2 = scmp.eq.s32.totalorder %s3746_s28, 1 }
   0x9   : > { %p197_p3 = scmp.ne.s32.totalorder %s3665_s25, %s3661_s24  ;;  %p198_p4 = scmp.eq.s32.totalorder %s2516_s29, 1 }
   0xa   : > { %s3761_s10 = scalar_select %p179_p1, %s3669_s26, %s181_s8  }
   0xb   : > { %p3763_p5 = por %p192_p2, %p191_p0  ;;  %p3767_p6 = por %p198_p4, %p197_p3 }
   0xc   : > { %4538 = sst [smem:[#allocation11_spill]] %s3761_s10  ;;  %p2517_p7 = scmp.ge.s32.totalorder %s3673_s27, 1 }
   0xd   : > { %s4539_s11 = scalar_select %p3763_p5, 1, 0 }
   0xe   : > { %s4540_s12 = scalar_select %p3767_p6, 1, 0 }
   0xf   : > { %p205_p8 = scmp.lt.s32.totalorder %s3673_s27, 3  ;;  %p4535_p9 = scmp.eq.s32.totalorder %s3746_s28, 0 }
  0x10   : > { %s3675_s14 = smov [#allocation2]   ;;  %s3676_s17 = smov [#allocation5]  }
  0x11   : > { %p3774_p10 = pnand %p2517_p7, %p205_p8  ;;  %s223_s15 = sshll.u32 %s3675_s14, 4  ;;  %s224_s15 = int_to_ptr.vmem [resolvable:$true] %s223_s15 }
  0x12   : > { %s239_s18 = sshll.u32 %s3676_s17, 4  ;;  %s3547_s21 = scalar_lea.hbm %s4530_s3, 3072  ;;  %s3786_s18 = int_to_ptr.vmem [resolvable:$true] %s239_s18 }
  0x13   : > { %s4541_s13 = scalar_select %p3774_p10, 1, 0 }
  0x14   : > { %p3488_p11 = pneg %p3774_p10  ;;  %p3548_p13 = scmp.ne.s32.totalorder %s4530_s3, %s3547_s21 }
  0x15   : > { %p3554_p3 = scmp.lt.u32.totalorder %s3547_s21, %s4530_s3 }
  0x16   : > { %p3782_p12 = pnand %p4535_p9, %p3488_p11 }
  0x18   : > { %p3549_p0 = pneg %p3782_p12 }
  0x1a   : > { %p3550_p1 = pnand %p3549_p0, %p3548_p13 }
  0x1c   : > { %p3551_p2 = pneg %p3550_p1 }
  0x1e   : > { %p3556_p4 = pnand %p3554_p3, %p3551_p2 }
  0x20   : > { %3559 = shalt.err (!%p3556_p4)
}
  0x21   : > { %s3560_s9 = scalar_lea.vmem %s224_s15, 3072  ;;  %p3568_p9 = scmp.lt.s32.totalorder %s224_s15, %s224_s15 }
  0x22   : > { %p3561_p7 = scmp.ne.s32.totalorder %s224_s15, %s3560_s9  ;;  %p3569_p6 = scmp.lt.s32.totalorder %s3560_s9, %s3560_s9 }
  0x24   : > { %p3563_p8 = pnand %p3561_p7, %p3549_p0  ;;  %p3570_p5 = por %p3569_p6, %p3568_p9 }
  0x26   : > { %p3564_p11 = pneg %p3563_p8 }
  0x28   : > { %p3571_p10 = pnand %p3570_p5, %p3564_p11 }
  0x2a   : > { %3574 = shalt.err (!%p3571_p10)
}
  0x2b   : > { %s3677_s14 = smov 128   ;;  %s3678_s17 = smov 8  }
  0x2c   : > { %3491 = dma.hbm_to_vmem [thread:$0]  (!%p3782_p12), %s4530_s3, 3072, %s224_s15, [#allocation3], %s3677_s14, %s3677_s14, %s3678_s17  }
  0x2d   : > { %s3575_s23 = scalar_lea.hbm %s4532_s5, 12288 }
  0x2e   : > { %p3576_p13 = scmp.ne.s32.totalorder %s4532_s5, %s3575_s23  ;;  %p3582_p9 = scmp.lt.u32.totalorder %s3575_s23, %s4532_s5 }
  0x30   : > { %p3578_p5 = pnand %p3576_p13, %p3549_p0 }
  0x32   : > { %p3579_p6 = pneg %p3578_p5 }
  0x34   : > { %p3584_p10 = pnand %p3582_p9, %p3579_p6 }
  0x36   : > { %3587 = shalt.err (!%p3584_p10)
}
  0x37   : > { %s3588_s15 = scalar_lea.vmem %s3786_s18, 12288  ;;  %p3596_p4 = scmp.lt.s32.totalorder %s3786_s18, %s3786_s18 }
  0x38   : > { %p3589_p1 = scmp.ne.s32.totalorder %s3786_s18, %s3588_s15  ;;  %p3597_p7 = scmp.lt.s32.totalorder %s3588_s15, %s3588_s15 }
  0x3a   : > { %p3591_p2 = pnand %p3589_p1, %p3549_p0  ;;  %p3598_p8 = por %p3597_p7, %p3596_p4 }
  0x3c   : > { %p3592_p3 = pneg %p3591_p2 }
  0x3e   : > { %p3599_p11 = pnand %p3598_p8, %p3592_p3 }
  0x40   : > { %3602 = shalt.err (!%p3599_p11)
}
  0x41   : > { %s3679_s10 = smov 512   ;;  %s3680_s14 = smov 32  }
  0x42   : > { %3494 = dma.hbm_to_vmem [thread:$0]  (!%p3782_p12), %s4532_s5, 12288, %s3786_s18, [#allocation6], %s3679_s10, %s3679_s10, %s3680_s14  }
  0x43   : > { %p4543_p13 = scmp.ne.s32.totalorder %s4541_s13, 0 }
  0x44   : > { %p4544_p0 = scmp.eq.s32.totalorder (!%p4543_p13), %s3746_s28, 0 }
  0x45   : > { %266 = sbr.rel (%p4543_p13) target bundleno = 1812 (0x714), region = 48 }
  0x4c   : > { %3648 = dma.done.wait (%p4544_p0), [#allocation3], 3072   ;;  %p4545_p5 = pmov %p4544_p0 }
  0x4d   : > { %p4546_p6 = pmov %p4544_p0 }
  0x4e   : > { %3650 = vsyncadd (%p4545_p5), [#allocation3], 4294964224 }
  0x4f   : > { %3652 = dma.done.wait (%p4546_p6), [#allocation6], 12288   ;;  %p4547_p9 = pmov %p4544_p0 }
  0x50   : > { %p302_p10 = scmp.lt.s32.totalorder %s3746_s28, 1  ;;  %v307_v0 = vlaneseq  ;;  %vm331_vm0 = vcmask 130048   ;;  %v3681_v10 = vmov 0.0   ;;  %v2537_v13 = vld [vmem:[%s4528_s1 + $0x80] sm:$0xff]  ;;  %v2538_v15 = vld [vmem:[%s4528_s1 + $0x88] sm:$0xff]  ;;  %v2539_v17 = vld [vmem:[%s4528_s1 + $0x90] sm:$0xff] }
  0x51   : > { %3654 = vsyncadd (%p4547_p9), [#allocation6], 4294955008  ;;  %v3070_v16 = vpack.c.bf16 %v2538_v15, %v2537_v13  ;;  %v2540_v18 = vld [vmem:[%s4528_s1 + $0x98] sm:$0xff]  ;;  %v2541_v22 = vld [vmem:[%s4528_s1 + $0xa0] sm:$0xff]  ;;  %vm947_vm5 = vcmask 523264   ;;  %s299_s8 = sand.u32 1, %s3665_s25  }
  0x52   : > { %s303_s16 = scalar_select %p302_p10, %s3746_s28, 1  ;;  %v3847_v1 = vshrl.u32 %v307_v0, 7  ;;  %v311_v2 = vand.u32 127, %v307_v0  ;;  %v3074_v21 = vpack.c.bf16 %v2540_v18, %v2539_v17  ;;  %v2542_v23 = vld [vmem:[%s4528_s1 + $0xa8] sm:$0xff]  ;;  %v2543_v25 = vld [vmem:[%s4528_s1 + $0xb0] sm:$0xff]  ;;  %v2544_v26 = vld [vmem:[%s4528_s1 + $0xb8] sm:$0xff] }
  0x53   : > { %v3078_v24 = vpack.c.bf16 %v2542_v23, %v2541_v22  ;;  %v3082_v27 = vpack.c.bf16 %v2544_v26, %v2543_v25  ;;  %v2545_v28 = vld [vmem:[%s4528_s1 + $0xc0] sm:$0xff]  ;;  %v2546_v29 = vld [vmem:[%s4528_s1 + $0xc8] sm:$0xff]  ;;  %v2547_v31 = vld [vmem:[%s4528_s1 + $0xd0] sm:$0xff]  ;;  %s2524_s9 = sshll.u32 %s299_s8, 6  ;;  %s2609_s15 = sshll.u32 %s3746_s28, 10 }
  0x54   : > { %s2608_s13 = sshll.u32 %s303_s16, 4  ;;  %v2527_v3 = vadd.s32 4294967295, %v3847_v1  ;;  %v309_v4 = vadd.s32 8, %v3847_v1  ;;  %v320_v5 = vadd.s32 1, %v3847_v1  ;;  %v3086_v30 = vpack.c.bf16 %v2546_v29, %v2545_v28  ;;  %v2548_v32 = vld [vmem:[%s4528_s1 + $0xd8] sm:$0xff]  ;;  %v2549_v34 = vld [vmem:[%s4528_s1 + $0xe0] sm:$0xff]  ;;  %s4474_s19 = scalar_lea.hbm %s4534_s7, %s2609_s15 }
  0x55   : > { %s306_s21 = scalar_lea.vmem %s4527_s0, %s2608_s13  ;;  %v3090_v33 = vpack.c.bf16 %v2548_v32, %v2547_v31  ;;  %v2550_v35 = vld [vmem:[%s4528_s1 + $0xe8] sm:$0xff]  ;;  %v2551_v37 = vld [vmem:[%s4528_s1 + $0xf0] sm:$0xff]  ;;  %v2552_v38 = vld [vmem:[%s4528_s1 + $0xf8] sm:$0xff]  ;;  %s4466_s10 = scalar_lea.vmem [#allocation7], %s2524_s9 }
  0x56   : > { %vm314_vm1 = vcmp.eq.s32.totalorder %v311_v2, %v2527_v3  ;;  %v2528_v6 = vadd.s32 4294967295, %v309_v4  ;;  %vm322_vm2 = vcmp.eq.s32.totalorder %v311_v2, %v320_v5  ;;  %v321_v7 = vadd.s32 1, %v309_v4  ;;  %v328_v8 = vld [vmem:[%s306_s21] sm:$0xff]  ;;  %v3855_v9 = vld [vmem:[%s306_s21 + $0x8] sm:$0xff]  ;;  %v496_v43 = vld [vmem:[%s4528_s1 + $0x10] sm:$0xff]  ;;  %s2432_s14 = sshll.u32 %s4466_s10, 4  ;;  %s4476_s14 = int_to_ptr.vmem [resolvable:$true] %s2432_s14 }
  0x57   : > { %v3858_v11 = vsel %vm314_vm1, 1.0, %v3681_v10  ;;  %v3861_v12 = vsel %vm322_vm2, 1.0, %v3681_v10  ;;  %v3062_v14 = vpack.c.bf16 %v3855_v9, %v328_v8  ;;  %v3094_v36 = vpack.c.bf16 %v2550_v35, %v2549_v34  ;;  %v494_v40 = vld [vmem:[%s4528_s1] sm:$0xff]  ;;  %v495_v41 = vld [vmem:[%s4528_s1 + $0x8] sm:$0xff]  ;;  %v497_v44 = vld [vmem:[%s4528_s1 + $0x18] sm:$0xff]  ;;  %s4486_s16 = scalar_lea.sflag [#allocation4], %s299_s8 }
  0x58   : > { %2862 = vmatprep.mubr.msk.f32.mxu0 %vm331_vm0, %v3858_v11  ;;  %vm315_vm3 = vcmp.eq.s32.totalorder %v311_v2, %v2528_v6  ;;  %2869 = vmatprep.mubr.msk.f32.mxu1 %vm331_vm0, %v3861_v12  ;;  %vm323_vm4 = vcmp.eq.s32.totalorder %v311_v2, %v321_v7  ;;  %v3098_v39 = vpack.c.bf16 %v2552_v38, %v2551_v37  ;;  %v498_v46 = vld [vmem:[%s4528_s1 + $0x20] sm:$0xff]  ;;  %v499_v47 = vld [vmem:[%s4528_s1 + $0x28] sm:$0xff]  ;;  %v500_v49 = vld [vmem:[%s4528_s1 + $0x30] sm:$0xff]  ;;  %s3603_s13 = scalar_lea.vmem %s4476_s14, 1024  ;;  %p4548_p1 = scmp.ne.s32.totalorder %s4539_s11, 0 }
  0x59   : > { %3063 = vmatprep.subr.bf16.mxu0 %v3062_v14  ;;  %3067 = vmatprep.subr.bf16.mxu1 %v3062_v14  ;;  %v3881_v19 = vsel %vm315_vm3, 1.0, %v3681_v10  ;;  %v3884_v20 = vsel %vm323_vm4, 1.0, %v3681_v10  ;;  %v3102_v42 = vpack.c.bf16 %v495_v41, %v494_v40  ;;  %v3106_v45 = vpack.c.bf16 %v497_v44, %v496_v43  ;;  %v501_v50 = vld [vmem:[%s4528_s1 + $0x38] sm:$0xff]  ;;  %v502_v52 = vld [vmem:[%s4528_s1 + $0x40] sm:$0xff]  ;;  %v503_v53 = vld [vmem:[%s4528_s1 + $0x48] sm:$0xff]  ;;  %p3604_p12 = scmp.ne.s32.totalorder %s4476_s14, %s3603_s13  ;;  %s3682_s18 = smov [#allocation7]  }
  0x5a   : > { %3065 = vmatpush3.bf16.msra.mxu0 %v3062_v14  ;;  %3069 = vmatpush3.bf16.msra.mxu1 %v3062_v14  ;;  %v3110_v48 = vpack.c.bf16 %v499_v47, %v498_v46  ;;  %v3114_v51 = vpack.c.bf16 %v501_v50, %v500_v49  ;;  %v3118_v54 = vpack.c.bf16 %v503_v53, %v502_v52  ;;  %v504_v55 = vld [vmem:[%s4528_s1 + $0x50] sm:$0xff]  ;;  %v505_v56 = vld [vmem:[%s4528_s1 + $0x58] sm:$0xff]  ;;  %v506_v58 = vld [vmem:[%s4528_s1 + $0x60] sm:$0xff]  ;;  %s3607_s20 = sshll.u32 %s3682_s18, 4  ;;  %s3608_s20 = int_to_ptr.vmem [resolvable:$false] %s3607_s20 }
  0x5b   : > { %3071 = vmatprep.subr.bf16.mxu0 %v3070_v16  ;;  %v3122_v57 = vpack.c.bf16 %v505_v56, %v504_v55  ;;  %v507_v59 = vld [vmem:[%s4528_s1 + $0x68] sm:$0xff]  ;;  %v508_v61 = vld [vmem:[%s4528_s1 + $0x70] sm:$0xff]  ;;  %v509_v62 = vld [vmem:[%s4528_s1 + $0x78] sm:$0xff]  ;;  %p3605_p2 = pnand %p3604_p12, %p4548_p1  ;;  %s3609_s21 = scalar_lea.vmem %s3608_s20, 2048 }
  0x5c   : > { %v3126_v60 = vpack.c.bf16 %v507_v59, %v506_v58  ;;  %v3130_v63 = vpack.c.bf16 %v509_v62, %v508_v61  ;;  %v2553_v0 = vld [vmem:[%s4528_s1 + $0x100] sm:$0xff]  ;;  %v2554_v2 = vld [vmem:[%s4528_s1 + $0x108] sm:$0xff]  ;;  %v2555_v4 = vld [vmem:[%s4528_s1 + $0x110] sm:$0xff]  ;;  %p3610_p4 = scmp.lt.s32.totalorder %s4476_s14, %s3608_s20  ;;  %p3611_p7 = scmp.lt.s32.totalorder %s3609_s21, %s3603_s13 }
  0x5d   : > { %2863 = vmatmul.mubr.msk.f32.vlgmr.msra.gmra.mrb[0].mxu0 %vm331_vm0, %v3881_v19  ;;  %2870 = vmatmul.mubr.msk.f32.vlgmr.msra.gmra.mrb[0].mxu1 %vm331_vm0, %v3884_v20  ;;  %v3134_v3 = vpack.c.bf16 %v2554_v2, %v2553_v0  ;;  %v2556_v5 = vld [vmem:[%s4528_s1 + $0x118] sm:$0xff]  ;;  %v2557_v14 = vld [vmem:[%s4528_s1 + $0x120] sm:$0xff]  ;;  %v2558_v15 = vld [vmem:[%s4528_s1 + $0x128] sm:$0xff]  ;;  %p3606_p3 = pneg %p3605_p2 }
  0x5e   : > { %3073 = vmatpush3.bf16.msra.mxu0 %v3070_v16  ;;  %2904 = vmatprep.mubr.f32.mxu0 %v328_v8  ;;  %v3142_v16 = vpack.c.bf16 %v2558_v15, %v2557_v14  ;;  %v2559_v17 = vld [vmem:[%s4528_s1 + $0x130] sm:$0xff]  ;;  %v2560_v18 = vld [vmem:[%s4528_s1 + $0x138] sm:$0xff]  ;;  %v2561_v22 = vld [vmem:[%s4528_s1 + $0x140] sm:$0xff]  ;;  %p3612_p8 = por %p3611_p7, %p3610_p4 }
  0x5f   : > { %3075 = vmatprep.subr.bf16.mxu0 %v3074_v21  ;;  %2981 = vmatprep.mubr.msk.f32.mxu1 %vm331_vm0, %v3858_v11  ;;  %v2562_v23 = vld [vmem:[%s4528_s1 + $0x148] sm:$0xff]  ;;  %v2563_v25 = vld [vmem:[%s4528_s1 + $0x150] sm:$0xff]  ;;  %v2564_v26 = vld [vmem:[%s4528_s1 + $0x158] sm:$0xff] }
  0x60   : > { %v2565_v28 = vld [vmem:[%s4528_s1 + $0x160] sm:$0xff]  ;;  %v2566_v29 = vld [vmem:[%s4528_s1 + $0x168] sm:$0xff]  ;;  %v2567_v31 = vld [vmem:[%s4528_s1 + $0x170] sm:$0xff]  ;;  %p3613_p11 = pnand %p3612_p8, %p3606_p3 }
  0x61   : > { %v2568_v32 = vld [vmem:[%s4528_s1 + $0x178] sm:$0xff]  ;;  %v2569_v34 = vld [vmem:[%s4529_s2] ss:$0 sm:$0xff]  ;;  %v940_v41 = vld [vmem:[#allocation2 + $0x48] sm:$0xff] }
  0x62   : > { %3077 = vmatpush3.bf16.msra.mxu0 %v3074_v21  ;;  %v3146_v21 = vpack.c.bf16 %v2560_v18, %v2559_v17  ;;  %v939_v40 = vld [vmem:[#allocation2 + $0x40] sm:$0xff]  ;;  %v941_v43 = vld [vmem:[#allocation2 + $0x50] sm:$0xff]  ;;  %v942_v44 = vld [vmem:[#allocation2 + $0x58] sm:$0xff] }
  0x63   : > { %3079 = vmatprep.subr.bf16.mxu0 %v3078_v24  ;;  %v943_v46 = vld [vmem:[#allocation2 + $0x60] sm:$0xff]  ;;  %v944_v47 = vld [vmem:[#allocation2 + $0x68] sm:$0xff]  ;;  %v945_v49 = vld [vmem:[#allocation2 + $0x70] sm:$0xff] }
  0x64   : > { %v946_v50 = vld [vmem:[#allocation2 + $0x78] sm:$0xff]  ;;  %v930_v52 = vld [vmem:[#allocation2] sm:$0xff]  ;;  %v931_v53 = vld [vmem:[#allocation2 + $0x8] sm:$0xff] }
  0x65   : > { %v932_v55 = vld [vmem:[#allocation2 + $0x10] sm:$0xff]  ;;  %v933_v56 = vld [vmem:[#allocation2 + $0x18] sm:$0xff]  ;;  %v934_v58 = vld [vmem:[#allocation2 + $0x20] sm:$0xff] }
  0x66   : > { %3081 = vmatpush3.bf16.msra.mxu0 %v3078_v24  ;;  %v3150_v24 = vpack.c.bf16 %v2562_v23, %v2561_v22  ;;  %v935_v59 = vld [vmem:[#allocation2 + $0x28] sm:$0xff]  ;;  %v936_v61 = vld [vmem:[#allocation2 + $0x30] sm:$0xff]  ;;  %v937_v62 = vld [vmem:[#allocation2 + $0x38] sm:$0xff] }
  0x67   : > { %3083 = vmatprep.subr.bf16.mxu0 %v3082_v27  ;;  %v1111_v0 = vld [vmem:[#allocation2 + $0x80] sm:$0xff]  ;;  %v1112_v2 = vld [vmem:[#allocation2 + $0x88] sm:$0xff]  ;;  %v1117_v17 = vld [vmem:[#allocation2 + $0xb0] sm:$0xff] }
  0x68   : > { %v1118_v18 = vld [vmem:[#allocation2 + $0xb8] sm:$0xff]  ;;  %v2580_v22 = vld [vmem:[%s4531_s4] ss:$0 sm:$0xff] }
  0x6a   : > { %3085 = vmatpush3.bf16.msra.mxu0 %v3082_v27  ;;  %v3154_v27 = vpack.c.bf16 %v2564_v26, %v2563_v25 }
  0x6b   : > { %3087 = vmatprep.subr.bf16.mxu0 %v3086_v30 }
  0x6e   : > { %3089 = vmatpush3.bf16.msra.mxu0 %v3086_v30  ;;  %v3158_v30 = vpack.c.bf16 %v2566_v29, %v2565_v28  ;;  %v1394_v28 = vld [vmem:[#allocation5 + $0x108] sm:$0xff] }
  0x6f   : > { %3091 = vmatprep.subr.bf16.mxu0 %v3090_v33  ;;  %v1398_v29 = vld [vmem:[#allocation5 + $0x128] sm:$0xff] }
  0x72   : > { %3093 = vmatpush3.bf16.msra.mxu0 %v3090_v33  ;;  %v3162_v33 = vpack.c.bf16 %v2568_v32, %v2567_v31  ;;  %v1397_v31 = vld [vmem:[#allocation5 + $0x120] sm:$0xff]  ;;  %v1402_v32 = vld [vmem:[#allocation5 + $0x148] sm:$0xff] }
  0x73   : > { %3095 = vmatprep.subr.bf16.mxu0 %v3094_v36 }
  0x76   : > { %3097 = vmatpush3.bf16.msra.mxu0 %v3094_v36 }
  0x77   : > { %3099 = vmatprep.subr.bf16.mxu0 %v3098_v39 }
  0x7a   : > { %3101 = vmatpush3.bf16.msra.mxu0 %v3098_v39 }
  0x7b   : > { %3103 = vmatprep.subr.bf16.mxu0 %v3102_v42 }
  0x7d   : > { %2905 = vmatmul.mubr.f32.vlgmr.msra.gmra.mrb[2].mxu0 %v3855_v9  ;;  %v3138_v9 = vpack.c.bf16 %v2556_v5, %v2555_v4  ;;  %v1113_v4 = vld [vmem:[#allocation2 + $0x90] sm:$0xff]  ;;  %v1114_v5 = vld [vmem:[#allocation2 + $0x98] sm:$0xff] }
  0x7e   : > { %3105 = vmatpush3.bf16.msra.mxu0 %v3102_v42  ;;  %v3174_v42 = vpack.c.bf16 %v940_v41, %v939_v40  ;;  %v1409_v41 = vld [vmem:[#allocation5 + $0x180] sm:$0xff] }
  0x7f   : > { %3107 = vmatprep.subr.bf16.mxu0 %v3106_v45 }
  0x82   : > { %3109 = vmatpush3.bf16.msra.mxu0 %v3106_v45  ;;  %v3178_v45 = vpack.c.bf16 %v942_v44, %v941_v43  ;;  %v1418_v43 = vld [vmem:[#allocation5 + $0x1c8] sm:$0xff] }
  0x83   : > { %3111 = vmatprep.subr.bf16.mxu0 %v3110_v48 }
  0x86   : > { %3113 = vmatpush3.bf16.msra.mxu0 %v3110_v48  ;;  %v3182_v48 = vpack.c.bf16 %v944_v47, %v943_v46  ;;  %v1417_v46 = vld [vmem:[#allocation5 + $0x1c0] sm:$0xff] }
  0x87   : > { %3115 = vmatprep.subr.bf16.mxu0 %v3114_v51  ;;  %v1421_v47 = vld [vmem:[#allocation5 + $0x1e0] sm:$0xff] }
  0x8a   : > { %3117 = vmatpush3.bf16.msra.mxu0 %v3114_v51  ;;  %v3186_v51 = vpack.c.bf16 %v946_v50, %v945_v49  ;;  %v1400_v49 = vld [vmem:[#allocation5 + $0x138] sm:$0xff] }
  0x8b   : > { %3119 = vmatprep.subr.bf16.mxu0 %v3118_v54 }
  0x8e   : > { %3121 = vmatpush3.bf16.msra.mxu0 %v3118_v54  ;;  %v3190_v54 = vpack.c.bf16 %v931_v53, %v930_v52  ;;  %v1399_v52 = vld [vmem:[#allocation5 + $0x130] sm:$0xff]  ;;  %v1404_v53 = vld [vmem:[#allocation5 + $0x158] sm:$0xff] }
  0x8f   : > { %3123 = vmatprep.subr.bf16.mxu0 %v3122_v57 }
  0x92   : > { %3125 = vmatpush3.bf16.msra.mxu0 %v3122_v57  ;;  %v3194_v57 = vpack.c.bf16 %v933_v56, %v932_v55 }
  0x93   : > { %3127 = vmatprep.subr.bf16.mxu0 %v3126_v60 }
  0x96   : > { %3129 = vmatpush3.bf16.msra.mxu0 %v3126_v60  ;;  %v3198_v60 = vpack.c.bf16 %v935_v59, %v934_v58  ;;  %v1407_v58 = vld [vmem:[#allocation5 + $0x170] sm:$0xff]  ;;  %v1412_v59 = vld [vmem:[#allocation5 + $0x198] sm:$0xff] }
  0x97   : > { %3131 = vmatprep.subr.bf16.mxu0 %v3130_v63 }
  0x9a   : > { %3133 = vmatpush3.bf16.msra.mxu0 %v3130_v63  ;;  %v3202_v63 = vpack.c.bf16 %v937_v62, %v936_v61 }
  0x9b   : > { %3135 = vmatprep.subr.bf16.mxu0 %v3134_v3 }
 0x130   : > { %v2864_v6 = vpop.f32.mrb[0].mxu0  ;;  %v2871_v7 = vpop.f32.mrb[0].mxu1 }
 0x131   : > { %v404_v8 = vpop.f32.mrb[1].mxu0  ;;  %v485_v13 = vpop.f32.mrb[1].mxu1 }
 0x132   : > { %2939 = vmatprep.mubr.f32.mxu0 %v404_v8  ;;  %v3210_v8 = vpack.c.bf16 %v1114_v5, %v1113_v4 }
 0x133   : > { %2940 = vmatmul.mubr.f32.vlgmr.msra.gmra.mrb[2].mxu0 %v2864_v6 }
 0x134   : > { %3137 = vmatpush3.bf16.msra.mxu0 %v3134_v3  ;;  %2974 = vmatprep.mubr.f32.mxu0 %v485_v13  ;;  %v3206_v3 = vpack.c.bf16 %v1112_v2, %v1111_v0  ;;  %v1116_v13 = vld [vmem:[#allocation2 + $0xa8] sm:$0xff]  ;;  %v1415_v0 = vld [vmem:[#allocation5 + $0x1b0] sm:$0xff]  ;;  %v1420_v2 = vld [vmem:[#allocation5 + $0x1d8] sm:$0xff] }
 0x135   : > { %3139 = vmatprep.subr.bf16.mxu0 %v3138_v9 }
 0x138   : > { %3141 = vmatpush3.bf16.msra.mxu0 %v3138_v9  ;;  %v1115_v9 = vld [vmem:[#allocation2 + $0xa0] sm:$0xff] }
 0x139   : > { %3143 = vmatprep.subr.bf16.mxu0 %v3142_v16  ;;  %v3214_v15 = vpack.c.bf16 %v1116_v13, %v1115_v9  ;;  %v1365_v9 = vld [vmem:[#allocation5 + $0x28] sm:$0xff] }
 0x13c   : > { %3145 = vmatpush3.bf16.msra.mxu0 %v3142_v16 }
 0x13d   : > { %3147 = vmatprep.subr.bf16.mxu0 %v3146_v21 }
 0x140   : > { %3149 = vmatpush3.bf16.msra.mxu0 %v3146_v21  ;;  %v3218_v21 = vpack.c.bf16 %v1118_v18, %v1117_v17  ;;  %v1369_v17 = vld [vmem:[#allocation5 + $0x48] sm:$0xff] }
 0x141   : > { %3151 = vmatprep.subr.bf16.mxu0 %v3150_v24  ;;  %v1373_v18 = vld [vmem:[#allocation5 + $0x68] sm:$0xff] }
 0x144   : > { %3153 = vmatpush3.bf16.msra.mxu0 %v3150_v24 }
 0x145   : > { %3155 = vmatprep.subr.bf16.mxu0 %v3154_v27 }
 0x148   : > { %3157 = vmatpush3.bf16.msra.mxu0 %v3154_v27 }
 0x149   : > { %3159 = vmatprep.subr.bf16.mxu0 %v3158_v30 }
 0x14c   : > { %3161 = vmatpush3.bf16.msra.mxu0 %v3158_v30  ;;  %v3230_v30 = vpack.c.bf16 %v1398_v29, %v1394_v28  ;;  %v1381_v28 = vld [vmem:[#allocation5 + $0xa8] sm:$0xff] }
 0x14d   : > { %3163 = vmatprep.subr.bf16.mxu0 %v3162_v33 }
 0x150   : > { %3165 = vmatpush3.bf16.msra.mxu0 %v3162_v33  ;;  %v1406_v33 = vld [vmem:[#allocation5 + $0x168] sm:$0xff] }
 0x153   : > { %2975 = vmatmul.mubr.f32.vlgmr.msra.gmra.mrb[2].mxu0 %v2871_v7 }
 0x226   : > { %v2976_v35 = vpop.f32.mrb[2].mxu0 }
 0x227   : > { %v778_v36 = vadd.f32 %v2976_v35, %v2569_v34  ;;  %v760_v37 = vpop.f32.mrb[3].mxu0  ;;  %v3234_v35 = vpack.c.bf16 %v1406_v33, %v1402_v32  ;;  %v1385_v32 = vld [vmem:[#allocation5 + $0xc8] sm:$0xff] }
 0x228   : > { %v777_v38 = vadd.f32 %v2569_v34, %v760_v37  ;;  %v1405_v37 = vld [vmem:[#allocation5 + $0x160] sm:$0xff]  ;;  %v1389_v33 = vld [vmem:[#allocation5 + $0xe8] sm:$0xff] }
 0x22a   : > { %v3166_v39 = vpack.c.bf16 %v778_v36, %v777_v38 }
 0x22c   : > { %3167 = vmatprep.subr.bf16.mxu1 %v3166_v39 }
 0x22d   : > { %3169 = vmatpush3.bf16.msra.mxu1 %v3166_v39 }
 0x22e   : > { %3171 = vmatprep.subr.bf16.mxu1 %v3166_v39 }
 0x230   : > { %2982 = vmatmul.mubr.msk.f32.vlgmr.msra.gmra.mrb[2].mxu1 %vm331_vm0, %v3881_v19 }
 0x231   : > { %3173 = vmatpush3.bf16.msra.mxu1 %v3166_v39  ;;  %2988 = vmatprep.mubr.msk.f32.mxu1 %vm331_vm0, %v3861_v12  ;;  %v1414_v39 = vld [vmem:[#allocation5 + $0x1a8] sm:$0xff] }
 0x232   : > { %3175 = vmatprep.subr.bf16.mxu1 %v3174_v42 }
 0x234   : > { %2989 = vmatmul.mubr.msk.f32.vlgmr.msra.gmra.mrb[4].mxu1 %vm331_vm0, %v3884_v20 }
 0x235   : > { %3177 = vmatpush3.bf16.msra.mxu1 %v3174_v42  ;;  %3007 = vmatprep.mubr.msk.f32.mxu1 %vm947_vm5, %v777_v38  ;;  %v1410_v38 = vld [vmem:[#allocation5 + $0x188] sm:$0xff]  ;;  %v1413_v42 = vld [vmem:[#allocation5 + $0x1a0] sm:$0xff] }
 0x236   : > { %3179 = vmatprep.subr.bf16.mxu1 %v3178_v45  ;;  %v3240_v44 = vpack.c.bf16 %v1413_v42, %v1409_v41  ;;  %v2010_v41 = vld [vmem:[%s4533_s6] sm:$0xff] }
 0x239   : > { %3181 = vmatpush3.bf16.msra.mxu1 %v3178_v45 }
 0x23a   : > { %3183 = vmatprep.subr.bf16.mxu1 %v3182_v48 }
 0x23d   : > { %3185 = vmatpush3.bf16.msra.mxu1 %v3182_v48  ;;  %v1396_v48 = vld [vmem:[#allocation5 + $0x118] sm:$0xff] }
 0x23e   : > { %3187 = vmatprep.subr.bf16.mxu1 %v3186_v51  ;;  %v3246_v50 = vpack.c.bf16 %v1400_v49, %v1396_v48  ;;  %v2013_v48 = vld [vmem:[%s4533_s6 + $0x18] sm:$0xff]  ;;  %v2030_v49 = vld [vmem:[%s4533_s6 + $0xa0] sm:$0xff] }
 0x241   : > { %3189 = vmatpush3.bf16.msra.mxu1 %v3186_v51  ;;  %v1395_v51 = vld [vmem:[#allocation5 + $0x110] sm:$0xff] }
 0x242   : > { %3191 = vmatprep.subr.bf16.mxu1 %v3190_v54  ;;  %v3248_v55 = vpack.c.bf16 %v1399_v52, %v1395_v51  ;;  %v2014_v52 = vld [vmem:[%s4533_s6 + $0x20] sm:$0xff] }
 0x244   : > { %3008 = vmatmul.mubr.msk.f32.vlgmr.msra.gmra.mrb[6].mxu1 %vm947_vm5, %v778_v36  ;;  %v1401_v36 = vld [vmem:[#allocation5 + $0x140] sm:$0xff] }
 0x245   : > { %3193 = vmatpush3.bf16.msra.mxu1 %v3190_v54  ;;  %v3236_v40 = vpack.c.bf16 %v1405_v37, %v1401_v36  ;;  %v1408_v54 = vld [vmem:[#allocation5 + $0x178] sm:$0xff]  ;;  %v1388_v36 = vld [vmem:[#allocation5 + $0xe0] sm:$0xff] }
 0x246   : > { %3195 = vmatprep.subr.bf16.mxu1 %v3194_v57  ;;  %v3250_v56 = vpack.c.bf16 %v1408_v54, %v1404_v53  ;;  %v2015_v53 = vld [vmem:[%s4533_s6 + $0x28] sm:$0xff] }
 0x247   : > { %v4120_v54 = vpack.c.bf16 %v2015_v53, %v2014_v52  ;;  %v1757_v52 = vld [vmem:[#allocation5 + $0x258] sm:$0xff] }
 0x248   : > { %v1761_v53 = vld [vmem:[#allocation5 + $0x278] sm:$0xff] }
 0x249   : > { %3197 = vmatpush3.bf16.msra.mxu1 %v3194_v57  ;;  %v1403_v57 = vld [vmem:[#allocation5 + $0x150] sm:$0xff] }
 0x24a   : > { %3199 = vmatprep.subr.bf16.mxu1 %v3198_v60  ;;  %v3252_v61 = vpack.c.bf16 %v1407_v58, %v1403_v57  ;;  %v1371_v57 = vld [vmem:[#allocation5 + $0x58] sm:$0xff] }
 0x24b   : > { %v1375_v58 = vld [vmem:[#allocation5 + $0x78] sm:$0xff] }
 0x24d   : > { %3201 = vmatpush3.bf16.msra.mxu1 %v3198_v60  ;;  %v1416_v60 = vld [vmem:[#allocation5 + $0x1b8] sm:$0xff] }
 0x24e   : > { %3203 = vmatprep.subr.bf16.mxu1 %v3202_v63  ;;  %v3254_v62 = vpack.c.bf16 %v1416_v60, %v1412_v59 }
 0x251   : > { %3205 = vmatpush3.bf16.msra.mxu1 %v3202_v63  ;;  %v1411_v63 = vld [vmem:[#allocation5 + $0x190] sm:$0xff] }
 0x252   : > { %3207 = vmatprep.subr.bf16.mxu1 %v3206_v3  ;;  %v3256_v4 = vpack.c.bf16 %v1415_v0, %v1411_v63  ;;  %v1374_v63 = vld [vmem:[#allocation5 + $0x70] sm:$0xff] }
 0x303   : > { %v2983_v6 = vpop.f32.mrb[2].mxu1 }
 0x304   : > { %v846_v7 = vpop.f32.mrb[3].mxu1 }
 0x305   : > { %3026 = vmatprep.mubr.msk.f32.mxu1 %vm947_vm5, %v846_v7  ;;  %v1423_v7 = vld [vmem:[#allocation5 + $0x1f0] sm:$0xff] }
 0x306   : > { %3027 = vmatmul.mubr.msk.f32.vlgmr.msra.gmra.mrb[6].mxu1 %vm947_vm5, %v2983_v6  ;;  %v1419_v6 = vld [vmem:[#allocation5 + $0x1d0] sm:$0xff] }
 0x307   : > { %3209 = vmatpush3.bf16.msra.mxu1 %v3206_v3  ;;  %v2990_v14 = vpop.f32.mrb[4].mxu1  ;;  %v1424_v3 = vld [vmem:[#allocation5 + $0x1f8] sm:$0xff]  ;;  %v3260_v13 = vpack.c.bf16 %v1423_v7, %v1419_v6  ;;  %v1378_v6 = vld [vmem:[#allocation5 + $0x90] sm:$0xff] }
 0x308   : > { %3211 = vmatprep.subr.bf16.mxu1 %v3210_v8  ;;  %v921_v16 = vpop.f32.mrb[5].mxu1  ;;  %v3258_v5 = vpack.c.bf16 %v1424_v3, %v1420_v2  ;;  %v1379_v2 = vld [vmem:[#allocation5 + $0x98] sm:$0xff]  ;;  %v1382_v7 = vld [vmem:[#allocation5 + $0xb0] sm:$0xff] }
 0x309   : > { %3045 = vmatprep.mubr.msk.f32.mxu1 %vm947_vm5, %v921_v16  ;;  %v1364_v16 = vld [vmem:[#allocation5 + $0x20] sm:$0xff]  ;;  %v1383_v3 = vld [vmem:[#allocation5 + $0xb8] sm:$0xff] }
 0x30b   : > { %3213 = vmatpush3.bf16.msra.mxu1 %v3210_v8  ;;  %v1361_v8 = vld [vmem:[#allocation5 + $0x8] sm:$0xff] }
 0x30c   : > { %3215 = vmatprep.subr.bf16.mxu1 %v3214_v15 }
 0x30f   : > { %3217 = vmatpush3.bf16.msra.mxu1 %v3214_v15  ;;  %v1360_v15 = vld [vmem:[#allocation5] sm:$0xff] }
 0x310   : > { %3219 = vmatprep.subr.bf16.mxu1 %v3218_v21 }
 0x313   : > { %3221 = vmatpush3.bf16.msra.mxu1 %v3218_v21  ;;  %v3264_v21 = vpack.c.bf16 %v1364_v16, %v1360_v15  ;;  %v3288_v15 = vpack.c.bf16 %v1382_v7, %v1378_v6  ;;  %v1772_v6 = vld [vmem:[#allocation5 + $0x2d0] sm:$0xff] }
 0x314   : > { %v1776_v7 = vld [vmem:[#allocation5 + $0x2f0] sm:$0xff] }
 0x316   : > { %3046 = vmatmul.mubr.msk.f32.vlgmr.msra.gmra.mrb[6].mxu1 %vm947_vm5, %v2990_v14  ;;  %v3262_v14 = vpack.c.bf16 %v1365_v9, %v1361_v8  ;;  %v1387_v9 = vld [vmem:[#allocation5 + $0xd8] sm:$0xff] }
 0x317   : > { %3052 = vmatprep.mubr.msk.f32.mxu1 %vm331_vm0, %v3858_v11  ;;  %v1393_v11 = vld [vmem:[#allocation5 + $0x100] sm:$0xff] }
 0x318   : > { %v3232_v34 = vpack.c.bf16 %v1397_v31, %v1393_v11  ;;  %v1376_v11 = vld [vmem:[#allocation5 + $0x80] sm:$0xff] }
 0x319   : > { %v1380_v31 = vld [vmem:[#allocation5 + $0xa0] sm:$0xff] }
 0x3e9   : > { %v3047_v23 = vpop.f32.mrb[6].mxu1 }
 0x3ea   : > { %v4045_v24 = vadd.f32 %v3047_v23, %v2580_v22  ;;  %v1191_v25 = vpop.f32.mrb[7].mxu1  ;;  %v1368_v23 = vld [vmem:[#allocation5 + $0x40] sm:$0xff] }
 0x3eb   : > { %v4047_v26 = vadd.f32 %v2580_v22, %v1191_v25  ;;  %v3266_v22 = vpack.c.bf16 %v1373_v18, %v1369_v17  ;;  %v1372_v25 = vld [vmem:[#allocation5 + $0x60] sm:$0xff]  ;;  %v1386_v17 = vld [vmem:[#allocation5 + $0xd0] sm:$0xff] }
 0x3ec   : > { %v3268_v29 = vpack.c.bf16 %v1372_v25, %v1368_v23  ;;  %v1390_v18 = vld [vmem:[#allocation5 + $0xf0] sm:$0xff] }
 0x3ed   : > { %v3222_v27 = vpack.c.bf16 %v4045_v24, %v4047_v26  ;;  %v3292_v23 = vpack.c.bf16 %v1390_v18, %v1386_v17  ;;  %v2016_v17 = vld [vmem:[%s4533_s6 + $0x30] sm:$0xff]  ;;  %v2035_v18 = vld [vmem:[%s4533_s6 + $0xc8] sm:$0xff] }
 0x3ef   : > { %3223 = vmatprep.subr.bf16.mxu1 %v3222_v27 }
 0x3f0   : > { %3225 = vmatpush3.bf16.msra.mxu1 %v3222_v27 }
 0x3f1   : > { %3227 = vmatprep.subr.bf16.mxu1 %v3222_v27 }
 0x3f3   : > { %3053 = vmatmul.mubr.msk.f32.vlgmr.msra.gmra.mrb[8].mxu1 %vm331_vm0, %v3881_v19  ;;  %v3238_v19 = vpack.c.bf16 %v1414_v39, %v1410_v38  ;;  %v1363_v38 = vld [vmem:[#allocation5 + $0x18] sm:$0xff] }
 0x3f4   : > { %3229 = vmatpush3.bf16.msra.mxu1 %v3222_v27  ;;  %3059 = vmatprep.mubr.msk.f32.mxu1 %vm331_vm0, %v3861_v12  ;;  %v1422_v12 = vld [vmem:[#allocation5 + $0x1e8] sm:$0xff]  ;;  %v1367_v39 = vld [vmem:[#allocation5 + $0x38] sm:$0xff] }
 0x3f5   : > { %3231 = vmatprep.subr.bf16.mxu1 %v3230_v30  ;;  %v3242_v45 = vpack.c.bf16 %v1422_v12, %v1418_v43  ;;  %v1377_v27 = vld [vmem:[#allocation5 + $0x88] sm:$0xff]  ;;  %v2028_v12 = vld [vmem:[%s4533_s6 + $0x90] sm:$0xff] }
 0x3f6   : > { %v3270_v30 = vpack.c.bf16 %v1381_v28, %v1377_v27  ;;  %v2011_v43 = vld [vmem:[%s4533_s6 + $0x8] sm:$0xff]  ;;  %v1746_v27 = vld [vmem:[#allocation5 + $0x200] sm:$0xff] }
 0x3f7   : > { %3060 = vmatmul.mubr.msk.f32.vlgmr.msra.gmra.mrb[10].mxu1 %vm331_vm0, %v3884_v20  ;;  %v3244_v20 = vpack.c.bf16 %v1421_v47, %v1417_v46  ;;  %v2012_v47 = vld [vmem:[%s4533_s6 + $0x10] sm:$0xff]  ;;  %v1750_v28 = vld [vmem:[#allocation5 + $0x220] sm:$0xff] }
 0x3f8   : > { %3233 = vmatpush1.bf16.msra.mxu1 %v3232_v34  ;;  %1495 = vmatprep.mubr.f32.mxu1 %v3681_v10  ;;  %v3272_v34 = vpack.c.bf16 %v1380_v31, %v1376_v11  ;;  %v3296_v11 = vpack.c.bf16 %v1750_v28, %v1746_v27  ;;  %v2058_v27 = vld [vmem:[%s4533_s6 + $0x180] sm:$0xff]  ;;  %v2059_v28 = vld [vmem:[%s4533_s6 + $0x188] sm:$0xff] }
 0x3f9   : > { %3235 = vmatprep.subr.bf16.mxu1 %v3234_v35  ;;  %v3274_v35 = vpack.c.bf16 %v1389_v33, %v1385_v32  ;;  %v1754_v32 = vld [vmem:[#allocation5 + $0x240] sm:$0xff] }
 0x3fa   : > { %v1758_v33 = vld [vmem:[#allocation5 + $0x260] sm:$0xff] }
 0x3fc   : > { %3237 = vmatpush1.bf16.msra.mxu1 %v3236_v40  ;;  %v3278_v40 = vpack.c.bf16 %v1367_v39, %v1363_v38  ;;  %v1766_v38 = vld [vmem:[#allocation5 + $0x2a0] sm:$0xff]  ;;  %v1771_v39 = vld [vmem:[#allocation5 + $0x2c8] sm:$0xff] }
 0x3fd   : > { %3239 = vmatprep.subr.bf16.mxu1 %v3238_v19  ;;  %v2027_v19 = vld [vmem:[%s4533_s6 + $0x88] sm:$0xff] }
 0x400   : > { %3241 = vmatpush1.bf16.msra.mxu1 %v3240_v44  ;;  %v2029_v44 = vld [vmem:[%s4533_s6 + $0x98] sm:$0xff] }
 0x401   : > { %3243 = vmatprep.subr.bf16.mxu1 %v3242_v45  ;;  %v4090_v45 = vpack.c.bf16 %v2011_v43, %v2010_v41  ;;  %v4092_v46 = vpack.c.bf16 %v2029_v44, %v2028_v12  ;;  %v1770_v41 = vld [vmem:[#allocation5 + $0x2c0] sm:$0xff]  ;;  %v1749_v12 = vld [vmem:[#allocation5 + $0x218] sm:$0xff] }
 0x402   : > { %v1774_v43 = vld [vmem:[#allocation5 + $0x2e0] sm:$0xff]  ;;  %v1753_v44 = vld [vmem:[#allocation5 + $0x238] sm:$0xff] }
 0x404   : > { %3245 = vmatpush1.bf16.msra.mxu1 %v3244_v20  ;;  %v2031_v20 = vld [vmem:[%s4533_s6 + $0xa8] sm:$0xff] }
 0x405   : > { %3247 = vmatprep.subr.bf16.mxu1 %v3246_v50  ;;  %v4108_v50 = vpack.c.bf16 %v2013_v48, %v2012_v47  ;;  %v4111_v51 = vpack.c.bf16 %v2031_v20, %v2030_v49  ;;  %v3308_v47 = vpack.c.bf16 %v1774_v43, %v1770_v41  ;;  %v3310_v48 = vpack.c.bf16 %v1753_v44, %v1749_v12  ;;  %v1748_v49 = vld [vmem:[#allocation5 + $0x210] sm:$0xff]  ;;  %v2045_v43 = vld [vmem:[%s4533_s6 + $0x118] sm:$0xff]  ;;  %v2022_v12 = vld [vmem:[%s4533_s6 + $0x60] sm:$0xff] }
 0x406   : > { %v1752_v20 = vld [vmem:[#allocation5 + $0x230] sm:$0xff]  ;;  %v2023_v44 = vld [vmem:[%s4533_s6 + $0x68] sm:$0xff] }
 0x407   : > { %2585 = vmatmul.mubr.msk.f32.vlgmr.msra.gmra.mrb[12].mxu1 %vm947_vm5, %v4047_v26 }
 0x408   : > { %3249 = vmatpush1.bf16.msra.mxu1 %v3248_v55  ;;  %1501 = vmatprep.mubr.f32.mxu1 %v3681_v10  ;;  %v1362_v55 = vld [vmem:[#allocation5 + $0x10] sm:$0xff] }
 0x409   : > { %3251 = vmatprep.subr.bf16.mxu1 %v3250_v56  ;;  %v1366_v56 = vld [vmem:[#allocation5 + $0x30] sm:$0xff] }
 0x40a   : > { %v3280_v59 = vpack.c.bf16 %v1366_v56, %v1362_v55  ;;  %v3312_v55 = vpack.c.bf16 %v1752_v20, %v1748_v49  ;;  %v3314_v56 = vpack.c.bf16 %v1761_v53, %v1757_v52  ;;  %v2062_v49 = vld [vmem:[%s4533_s6 + $0x1a0] sm:$0xff]  ;;  %v2063_v20 = vld [vmem:[%s4533_s6 + $0x1a8] sm:$0xff]  ;;  %v2040_v53 = vld [vmem:[%s4533_s6 + $0xf0] sm:$0xff] }
 0x40b   : > { %2586 = vmatmul.mubr.msk.f32.gmra.mrb[14].mxu1 %vm947_vm5, %v4045_v24  ;;  %v4258_v52 = vpack.c.bf16 %v2063_v20, %v2062_v49 }
 0x40c   : > { %3253 = vmatpush1.bf16.msra.mxu1 %v3252_v61  ;;  %1572 = vmatprep.mubr.f32.mxu1 %v3681_v10  ;;  %v3282_v61 = vpack.c.bf16 %v1375_v58, %v1371_v57  ;;  %v1756_v57 = vld [vmem:[#allocation5 + $0x250] sm:$0xff] }
 0x40d   : > { %3255 = vmatprep.subr.bf16.mxu1 %v3254_v62  ;;  %v1370_v62 = vld [vmem:[#allocation5 + $0x50] sm:$0xff] }
 0x40e   : > { %v1760_v58 = vld [vmem:[#allocation5 + $0x270] sm:$0xff] }
 0x410   : > { %3257 = vmatpush1.bf16.msra.mxu1 %v3256_v4  ;;  %v3284_v4 = vpack.c.bf16 %v1374_v63, %v1370_v62  ;;  %v1764_v63 = vld [vmem:[#allocation5 + $0x290] sm:$0xff] }
 0x411   : > { %3259 = vmatprep.subr.bf16.mxu1 %v3258_v5  ;;  %v3286_v5 = vpack.c.bf16 %v1383_v3, %v1379_v2  ;;  %v1773_v2 = vld [vmem:[#allocation5 + $0x2d8] sm:$0xff] }
 0x412   : > { %v1777_v3 = vld [vmem:[#allocation5 + $0x2f8] sm:$0xff] }
 0x414   : > { %3261 = vmatpush1.bf16.msra.mxu1 %v3260_v13  ;;  %v1391_v13 = vld [vmem:[#allocation5 + $0xf8] sm:$0xff] }
 0x415   : > { %3263 = vmatprep.subr.bf16.mxu1 %v3262_v14  ;;  %v3290_v16 = vpack.c.bf16 %v1391_v13, %v1387_v9  ;;  %v3324_v9 = vpack.c.bf16 %v1776_v7, %v1772_v6  ;;  %v2032_v13 = vld [vmem:[%s4533_s6 + $0xb0] sm:$0xff]  ;;  %v2066_v6 = vld [vmem:[%s4533_s6 + $0x1c0] sm:$0xff]  ;;  %v2067_v7 = vld [vmem:[%s4533_s6 + $0x1c8] sm:$0xff] }
 0x417   : > { %2587 = vmatmul.mubr.msk.f32.vlgmr.msra.gmra.mrb[16].mxu1 %vm947_vm5, %v4047_v26  ;;  %v1384_v26 = vld [vmem:[#allocation5 + $0xc0] sm:$0xff] }
 0x418   : > { %1578 = vmatprep.mubr.f32.mxu1 %v3681_v10  ;;  %3265 = vmatpush1.bf16.msra.mxu1 %v3264_v21  ;;  %v3276_v37 = vpack.c.bf16 %v1388_v36, %v1384_v26  ;;  %v1747_v21 = vld [vmem:[#allocation5 + $0x208] sm:$0xff]  ;;  %v3300_v26 = vpack.c.bf16 %v1758_v33, %v1754_v32 }
 0x419   : > { %3267 = vmatprep.subr.bf16.mxu1 %v3266_v22  ;;  %v1751_v22 = vld [vmem:[#allocation5 + $0x228] sm:$0xff] }
 0x41a   : > { %v3294_v25 = vpack.c.bf16 %v1751_v22, %v1747_v21  ;;  %v2018_v22 = vld [vmem:[%s4533_s6 + $0x40] sm:$0xff]  ;;  %v2043_v33 = vld [vmem:[%s4533_s6 + $0x108] sm:$0xff] }
 0x41b   : > { %2588 = vmatmul.mubr.msk.f32.gmra.mrb[18].mxu1 %vm947_vm5, %v4045_v24  ;;  %v2026_v24 = vld [vmem:[%s4533_s6 + $0x80] sm:$0xff] }
 0x41c   : > { %3269 = vmatpush1.bf16.msra.mxu1 %v3268_v29  ;;  %1655 = vmatprep.mubr.f32.mxu1 %v3681_v10  ;;  %v4079_v42 = vpack.c.bf16 %v2027_v19, %v2026_v24  ;;  %v1755_v29 = vld [vmem:[#allocation5 + $0x248] sm:$0xff] }
 0x41d   : > { %3271 = vmatprep.subr.bf16.mxu1 %v3270_v30  ;;  %v1759_v30 = vld [vmem:[#allocation5 + $0x268] sm:$0xff] }
 0x41e   : > { %3327 = vmatprep.subr.bf16.mxu0 %v4079_v42  ;;  %v3298_v31 = vpack.c.bf16 %v1759_v30, %v1755_v29  ;;  %v3358_v29 = vpack.c.bf16 %v2059_v28, %v2058_v27  ;;  %v2036_v30 = vld [vmem:[%s4533_s6 + $0xd0] sm:$0xff]  ;;  %v2070_v28 = vld [vmem:[%s4533_s6 + $0x1e0] sm:$0xff] }
 0x41f   : > { %3329 = vmatpush3.bf16.msra.mxu0 %v4090_v45 }
 0x420   : > { %3273 = vmatpush1.bf16.msra.mxu1 %v3272_v34  ;;  %3331 = vmatprep.subr.bf16.mxu0 %v4092_v46  ;;  %v1763_v34 = vld [vmem:[#allocation5 + $0x288] sm:$0xff] }
 0x421   : > { %3275 = vmatprep.subr.bf16.mxu1 %v3274_v35  ;;  %v1767_v35 = vld [vmem:[#allocation5 + $0x2a8] sm:$0xff] }
 0x422   : > { %v3302_v36 = vpack.c.bf16 %v1767_v35, %v1763_v34  ;;  %v2020_v34 = vld [vmem:[%s4533_s6 + $0x50] sm:$0xff]  ;;  %v2021_v35 = vld [vmem:[%s4533_s6 + $0x58] sm:$0xff] }
 0x423   : > { %3333 = vmatpush3.bf16.msra.mxu0 %v4108_v50 }
 0x424   : > { %3277 = vmatpush1.bf16.msra.mxu1 %v3276_v37  ;;  %3335 = vmatprep.subr.bf16.mxu0 %v4111_v51  ;;  %v1762_v37 = vld [vmem:[#allocation5 + $0x280] sm:$0xff] }
 0x425   : > { %3279 = vmatprep.subr.bf16.mxu1 %v3278_v40  ;;  %v1775_v40 = vld [vmem:[#allocation5 + $0x2e8] sm:$0xff]  ;;  %v3304_v24 = vpack.c.bf16 %v1766_v38, %v1762_v37  ;;  %v2060_v37 = vld [vmem:[%s4533_s6 + $0x190] sm:$0xff]  ;;  %v2061_v38 = vld [vmem:[%s4533_s6 + $0x198] sm:$0xff] }
 0x426   : > { %v3306_v19 = vpack.c.bf16 %v1775_v40, %v1771_v39  ;;  %v4222_v39 = vpack.c.bf16 %v2061_v38, %v2060_v37  ;;  %v2038_v40 = vld [vmem:[%s4533_s6 + $0xe0] sm:$0xff]  ;;  %v2056_v38 = vld [vmem:[%s4533_s6 + $0x170] sm:$0xff] }
 0x427   : > { %3337 = vmatpush3.bf16.msra.mxu0 %v4120_v54 }
 0x4c6   : > { %v3054_v60 = vpop.f32.mrb[8].mxu1 }
 0x4c7   : > { %v1276_v0 = vpop.f32.mrb[9].mxu1 }
 0x4c8   : > { %2589 = vmatmul.mubr.msk.f32.vlgmr.msra.gmra.mrb[12].mxu1 %vm947_vm5, %v1276_v0 }
 0x4c9   : > { %3281 = vmatpush1.bf16.msra.mxu1 %v3280_v59  ;;  %1661 = vmatprep.mubr.f32.mxu1 %v3681_v10  ;;  %v1765_v59 = vld [vmem:[#allocation5 + $0x298] sm:$0xff] }
 0x4ca   : > { %3283 = vmatprep.subr.bf16.mxu1 %v3282_v61  ;;  %v4126_v8 = vpop.f32.mrb[10].mxu1  ;;  %v3316_v61 = vpack.c.bf16 %v1760_v58, %v1756_v57  ;;  %v2047_v58 = vld [vmem:[%s4533_s6 + $0x128] sm:$0xff] }
 0x4cb   : > { %v4128_v14 = vpop.f32.mrb[11].mxu1 }
 0x4cc   : > { %2590 = vmatmul.mubr.msk.f32.gmra.mrb[14].mxu1 %vm947_vm5, %v3054_v60 }
 0x4cd   : > { %3285 = vmatpush1.bf16.msra.mxu1 %v3284_v4  ;;  %1732 = vmatprep.mubr.f32.mxu1 %v3681_v10 }
 0x4ce   : > { %3287 = vmatprep.subr.bf16.mxu1 %v3286_v5  ;;  %v3322_v5 = vpack.c.bf16 %v1777_v3, %v1773_v2  ;;  %v2048_v3 = vld [vmem:[%s4533_s6 + $0x130] sm:$0xff] }
 0x4d1   : > { %3289 = vmatpush1.bf16.msra.mxu1 %v3288_v15  ;;  %v2033_v15 = vld [vmem:[%s4533_s6 + $0xb8] sm:$0xff] }
 0x4d2   : > { %3291 = vmatprep.subr.bf16.mxu1 %v3290_v16  ;;  %v4153_v16 = vpack.c.bf16 %v2033_v15, %v2032_v13  ;;  %v2050_v13 = vld [vmem:[%s4533_s6 + $0x140] sm:$0xff]  ;;  %v2051_v15 = vld [vmem:[%s4533_s6 + $0x148] sm:$0xff] }
 0x4d4   : > { %3339 = vmatprep.subr.bf16.mxu0 %v4153_v16 }
 0x4d5   : > { %3293 = vmatpush1.bf16.msra.mxu1 %v3292_v23  ;;  %v2019_v23 = vld [vmem:[%s4533_s6 + $0x48] sm:$0xff] }
 0x4d6   : > { %3295 = vmatprep.subr.bf16.mxu1 %v3294_v25  ;;  %v4179_v25 = vpack.c.bf16 %v2019_v23, %v2018_v22  ;;  %v2052_v22 = vld [vmem:[%s4533_s6 + $0x150] sm:$0xff]  ;;  %v2053_v23 = vld [vmem:[%s4533_s6 + $0x158] sm:$0xff] }
 0x4d7   : > { %v4338_v27 = vpack.c.bf16 %v2053_v23, %v2052_v22 }
 0x4d8   : > { %2591 = vmatmul.mubr.msk.f32.vlgmr.msra.gmra.mrb[16].mxu1 %vm947_vm5, %v1276_v0  ;;  %v1768_v0 = vld [vmem:[#allocation5 + $0x2b0] sm:$0xff] }
 0x4d9   : > { %3297 = vmatpush1.bf16.msra.mxu1 %v3296_v11  ;;  %1738 = vmatprep.mubr.f32.mxu1 %v3681_v10  ;;  %v3320_v4 = vpack.c.bf16 %v1768_v0, %v1764_v63  ;;  %v2037_v11 = vld [vmem:[%s4533_s6 + $0xd8] sm:$0xff]  ;;  %v2064_v63 = vld [vmem:[%s4533_s6 + $0x1b0] sm:$0xff] }
 0x4da   : > { %3299 = vmatprep.subr.bf16.mxu1 %v3298_v31  ;;  %v2042_v31 = vld [vmem:[%s4533_s6 + $0x100] sm:$0xff]  ;;  %v4198_v32 = vpack.c.bf16 %v2037_v11, %v2036_v30  ;;  %v2065_v0 = vld [vmem:[%s4533_s6 + $0x1b8] sm:$0xff] }
 0x4db   : > { %v4294_v2 = vpack.c.bf16 %v2065_v0, %v2064_v63  ;;  %v2054_v11 = vld [vmem:[%s4533_s6 + $0x160] sm:$0xff] }
 0x4dc   : > { %2592 = vmatmul.mubr.msk.f32.gmra.mrb[18].mxu1 %vm947_vm5, %v3054_v60  ;;  %v1769_v60 = vld [vmem:[#allocation5 + $0x2b8] sm:$0xff] }
 0x4dd   : > { %3301 = vmatpush1.bf16.msra.mxu1 %v3300_v26  ;;  %1848 = vmatprep.mubr.f32.mxu1 %v3681_v10  ;;  %v3318_v62 = vpack.c.bf16 %v1769_v60, %v1765_v59  ;;  %v4209_v26 = vpack.c.bf16 %v2043_v33, %v2042_v31  ;;  %v2024_v59 = vld [vmem:[%s4533_s6 + $0x70] sm:$0xff]  ;;  %v2025_v60 = vld [vmem:[%s4533_s6 + $0x78] sm:$0xff]  ;;  %v2055_v31 = vld [vmem:[%s4533_s6 + $0x168] sm:$0xff] }
 0x4de   : > { %3303 = vmatprep.subr.bf16.mxu1 %v3302_v36  ;;  %v4211_v36 = vpack.c.bf16 %v2021_v35, %v2020_v34  ;;  %v4356_v33 = vpack.c.bf16 %v2055_v31, %v2054_v11  ;;  %v2072_v34 = vld [vmem:[%s4533_s6 + $0x1f0] sm:$0xff]  ;;  %v2073_v35 = vld [vmem:[%s4533_s6 + $0x1f8] sm:$0xff] }
 0x4df   : > { %v4366_v37 = vpack.c.bf16 %v2073_v35, %v2072_v34 }
 0x4e1   : > { %3305 = vmatpush1.bf16.msra.mxu1 %v3304_v24  ;;  %v2039_v24 = vld [vmem:[%s4533_s6 + $0xe8] sm:$0xff] }
 0x4e2   : > { %3307 = vmatprep.subr.bf16.mxu1 %v3306_v19  ;;  %v2044_v19 = vld [vmem:[%s4533_s6 + $0x110] sm:$0xff]  ;;  %v4233_v41 = vpack.c.bf16 %v2039_v24, %v2038_v40  ;;  %v2057_v40 = vld [vmem:[%s4533_s6 + $0x178] sm:$0xff] }
 0x4e3   : > { %v4374_v24 = vpack.c.bf16 %v2057_v40, %v2056_v38 }
 0x4e5   : > { %3309 = vmatpush1.bf16.msra.mxu1 %v3308_v47  ;;  %v4245_v47 = vpack.c.bf16 %v2045_v43, %v2044_v19 }
 0x4e6   : > { %3311 = vmatprep.subr.bf16.mxu1 %v3310_v48  ;;  %v4247_v48 = vpack.c.bf16 %v2023_v44, %v2022_v12 }
 0x4e8   : > { %2593 = vmatmul.mubr.msk.f32.vlgmr.msra.gmra.mrb[12].mxu1 %vm947_vm5, %v4128_v14 }
 0x4e9   : > { %3313 = vmatpush1.bf16.msra.mxu1 %v3312_v55  ;;  %1854 = vmatprep.mubr.f32.mxu1 %v3681_v10  ;;  %v2041_v55 = vld [vmem:[%s4533_s6 + $0xf8] sm:$0xff] }
 0x4ea   : > { %3315 = vmatprep.subr.bf16.mxu1 %v3314_v56  ;;  %v2046_v56 = vld [vmem:[%s4533_s6 + $0x120] sm:$0xff]  ;;  %v4269_v57 = vpack.c.bf16 %v2041_v55, %v2040_v53 }
 0x4ec   : > { %2594 = vmatmul.mubr.msk.f32.gmra.mrb[14].mxu1 %vm947_vm5, %v4126_v8 }
 0x4ed   : > { %3317 = vmatpush1.bf16.msra.mxu1 %v3316_v61  ;;  %1925 = vmatprep.mubr.f32.mxu1 %v3681_v10  ;;  %v4281_v61 = vpack.c.bf16 %v2047_v58, %v2046_v56 }
 0x4ee   : > { %3319 = vmatprep.subr.bf16.mxu1 %v3318_v62  ;;  %v4283_v62 = vpack.c.bf16 %v2025_v60, %v2024_v59 }
 0x4f1   : > { %3321 = vmatpush1.bf16.msra.mxu1 %v3320_v4  ;;  %v2049_v4 = vld [vmem:[%s4533_s6 + $0x138] sm:$0xff] }
 0x4f2   : > { %3323 = vmatprep.subr.bf16.mxu1 %v3322_v5  ;;  %v4302_v5 = vpack.c.bf16 %v2049_v4, %v2048_v3 }
 0x4f5   : > { %3325 = vmatpush1.bf16.msra.mxu1 %v3324_v9  ;;  %v4312_v9 = vpack.c.bf16 %v2067_v7, %v2066_v6 }
 0x4f6   : > { %3423 = vmatprep.subr.bf16.mxu1 %v3358_v29 }
 0x4f8   : > { %2595 = vmatmul.mubr.msk.f32.vlgmr.msra.gmra.mrb[16].mxu1 %vm947_vm5, %v4128_v14 }
 0x4f9   : > { %1931 = vmatprep.mubr.f32.mxu1 %v3681_v10  ;;  %v2017_v10 = vld [vmem:[%s4533_s6 + $0x38] sm:$0xff]  ;;  %3425 = vmatpush3.bf16.msra.mxu1 %v4209_v26 }
 0x4fa   : > { %v4161_v14 = vpack.c.bf16 %v2017_v10, %v2016_v17  ;;  %3427 = vmatprep.subr.bf16.mxu1 %v4222_v39  ;;  %v4320_v17 = vpack.c.bf16 %v2051_v15, %v2050_v13  ;;  %v2068_v10 = vld [vmem:[%s4533_s6 + $0x1d0] sm:$0xff] }
 0x4fc   : > { %2596 = vmatmul.mubr.msk.f32.gmra.mrb[18].mxu1 %vm947_vm5, %v4126_v8  ;;  %3341 = vmatpush3.bf16.msra.mxu0 %v4161_v14  ;;  %v2034_v8 = vld [vmem:[%s4533_s6 + $0xc0] sm:$0xff] }
 0x4fd   : > { %v4171_v21 = vpack.c.bf16 %v2035_v18, %v2034_v8  ;;  %3429 = vmatpush3.bf16.msra.mxu1 %v4245_v47  ;;  %v2069_v8 = vld [vmem:[%s4533_s6 + $0x1d8] sm:$0xff] }
 0x4fe   : > { %3431 = vmatprep.subr.bf16.mxu1 %v4258_v52  ;;  %v4330_v18 = vpack.c.bf16 %v2069_v8, %v2068_v10 }
 0x4ff   : > { %3343 = vmatprep.subr.bf16.mxu0 %v4171_v21 }
 0x500   : > { %3345 = vmatpush3.bf16.msra.mxu0 %v4179_v25 }
 0x501   : > { %3347 = vmatprep.subr.bf16.mxu0 %v4198_v32  ;;  %3433 = vmatpush3.bf16.msra.mxu1 %v4281_v61 }
 0x502   : > { %3435 = vmatprep.subr.bf16.mxu1 %v4294_v2 }
 0x504   : > { %3349 = vmatpush3.bf16.msra.mxu0 %v4211_v36 }
 0x505   : > { %3351 = vmatprep.subr.bf16.mxu0 %v4233_v41  ;;  %3437 = vmatpush3.bf16.msra.mxu1 %v4302_v5 }
 0x506   : > { %3439 = vmatprep.subr.bf16.mxu1 %v4312_v9 }
 0x508   : > { %3353 = vmatpush3.bf16.msra.mxu0 %v4247_v48 }
 0x509   : > { %3355 = vmatprep.subr.bf16.mxu0 %v4269_v57  ;;  %3441 = vmatpush3.bf16.msra.mxu1 %v4320_v17 }
 0x50a   : > { %3443 = vmatprep.subr.bf16.mxu1 %v4330_v18 }
 0x50c   : > { %3357 = vmatpush3.bf16.msra.mxu0 %v4283_v62 }
 0x50d   : > { %3359 = vmatprep.subr.bf16.mxu0 %v3358_v29  ;;  %3445 = vmatpush3.bf16.msra.mxu1 %v4338_v27  ;;  %v2071_v29 = vld [vmem:[%s4533_s6 + $0x1e8] sm:$0xff] }
 0x50e   : > { %v4348_v30 = vpack.c.bf16 %v2071_v29, %v2070_v28 }
 0x510   : > { %3447 = vmatprep.subr.bf16.mxu1 %v4348_v30 }
 0x511   : > { %3449 = vmatpush3.bf16.msra.mxu1 %v4356_v33 }
 0x512   : > { %3451 = vmatprep.subr.bf16.mxu1 %v4366_v37 }
 0x515   : > { %3453 = vmatpush3.bf16.msra.mxu1 %v4374_v24 }
 0x5bb   : > { %v4378_v19 = vpop.f32.mrb[12].mxu1 }
 0x5bc   : > { %v4380_v43 = vpop.f32.mrb[13].mxu1  ;;  %v1974_v44 = vmul.f32 %v4378_v19, %v4378_v19 }
 0x5bd   : > { %v1975_v55 = vmul.f32 %v4380_v43, %v4380_v43 }
 0x5bf   : > { %v4382_v12 = vpop.f32.mrb[14].mxu1 }
 0x5c0   : > { %v1946_v49 = vadd.f32 %v4382_v12, %v4378_v19  ;;  %v1978_v20 = vmul.f32 %v4382_v12, %v4382_v12  ;;  %v4390_v53 = vpop.f32.mrb[15].mxu1 }
 0x5c1   : > { %v1953_v56 = vadd.f32 %v4390_v53, %v4380_v43  ;;  %v1979_v58 = vmul.f32 %v4390_v53, %v4390_v53 }
 0x5c2   : > { %v1947_v59 = vrot.slane %v1946_v49, 4  ;;  %v4398_v60 = vadd.f32 %v1978_v20, %v1974_v44 }
 0x5c3   : > { %v1954_v63 = vrot.slane %v1953_v56, 4  ;;  %v1989_v0 = vadd.f32 %v1979_v58, %v1975_v55 }
 0x5c4   : > { %v1948_v3 = vadd.f32 %v1947_v59, %v1946_v49 }
 0x5c5   : > { %v1955_v4 = vadd.f32 %v1954_v63, %v1953_v56 }
 0x5c6   : > { %v1949_v6 = vrot.slane %v1948_v3, 2 }
 0x5c7   : > { %v1956_v7 = vrot.slane %v1955_v4, 2 }
 0x5c8   : > { %v1950_v13 = vadd.f32 %v1949_v6, %v1948_v3 }
 0x5c9   : > { %v1957_v15 = vadd.f32 %v1956_v7, %v1955_v4 }
 0x5ca   : > { %v1951_v10 = vrot.slane %v1950_v13, 1 }
 0x5cb   : > { %v4400_v8 = vpop.f32.mrb[16].mxu1  ;;  %v1958_v22 = vrot.slane %v1957_v15, 1 }
 0x5cc   : > { %v4402_v23 = vpop.f32.mrb[17].mxu1  ;;  %v1952_v29 = vadd.f32 %v1951_v10, %v1950_v13  ;;  %v1976_v31 = vmul.f32 %v4400_v8, %v4400_v8 }
 0x5cd   : > { %v1959_v28 = vadd.f32 %v1958_v22, %v1957_v15  ;;  %v1977_v40 = vmul.f32 %v4402_v23, %v4402_v23 }
 0x5cf   : > { %v4404_v11 = vpop.f32.mrb[18].mxu1  ;;  %2138 = vmatprep.mubr.f32.mxu0 %v1959_v28 }
 0x5d0   : > { %v1960_v34 = vadd.f32 %v4404_v11, %v4400_v8  ;;  %v1980_v35 = vmul.f32 %v4404_v11, %v4404_v11  ;;  %v4412_v38 = vpop.f32.mrb[19].mxu1  ;;  %2139 = vmatmul.mubr.f32.vlgmr.msra.gmra.mrb[4].mxu0 %v1952_v29 }
 0x5d1   : > { %v1967_v44 = vadd.f32 %v4412_v38, %v4402_v23  ;;  %v1981_v49 = vmul.f32 %v4412_v38, %v4412_v38  ;;  %3361 = vmatpush3.bf16.msra.mxu0 %v4209_v26 }
 0x5d2   : > { %v1996_v20 = vadd.f32 %v1980_v35, %v1976_v31  ;;  %3363 = vmatprep.subr.bf16.mxu0 %v4222_v39  ;;  %v1961_v15 = vrot.slane %v1960_v34, 4  ;;  %v1990_v39 = vrot.slane %v1989_v0, 4 }
 0x5d3   : > { %v1968_v55 = vrot.slane %v1967_v44, 4  ;;  %v2003_v56 = vadd.f32 %v1981_v49, %v1977_v40 }
 0x5d4   : > { %v1997_v58 = vrot.slane %v1996_v20, 4  ;;  %v1991_v35 = vadd.f32 %v1990_v39, %v1989_v0 }
 0x5d5   : > { %v1969_v59 = vadd.f32 %v1968_v55, %v1967_v44  ;;  %v2004_v63 = vrot.slane %v2003_v56, 4  ;;  %3365 = vmatpush3.bf16.msra.mxu0 %v4245_v47 }
 0x5d6   : > { %v1998_v3 = vadd.f32 %v1997_v58, %v1996_v20  ;;  %3367 = vmatprep.subr.bf16.mxu0 %v4258_v52  ;;  %v1962_v52 = vadd.f32 %v1961_v15, %v1960_v34 }
 0x5d7   : > { %v1970_v4 = vrot.slane %v1969_v59, 2  ;;  %v2005_v6 = vadd.f32 %v2004_v63, %v2003_v56 }
 0x5d8   : > { %v1999_v7 = vrot.slane %v1998_v3, 2  ;;  %v1963_v44 = vrot.slane %v1962_v52, 2 }
 0x5d9   : > { %3369 = vmatpush3.bf16.msra.mxu0 %v4281_v61  ;;  %v1971_v13 = vadd.f32 %v1970_v4, %v1969_v59  ;;  %v2006_v26 = vrot.slane %v2005_v6, 2 }
 0x5da   : > { %v2000_v10 = vadd.f32 %v1999_v7, %v1998_v3  ;;  %3371 = vmatprep.subr.bf16.mxu0 %v4294_v2  ;;  %v1992_v2 = vrot.slane %v1991_v35, 2 }
 0x5db   : > { %v1972_v22 = vrot.slane %v1971_v13, 1  ;;  %v2007_v28 = vadd.f32 %v2006_v26, %v2005_v6 }
 0x5dc   : > { %v2001_v29 = vrot.slane %v2000_v10, 1  ;;  %v1993_v34 = vadd.f32 %v1992_v2, %v1991_v35 }
 0x5dd   : > { %3373 = vmatpush3.bf16.msra.mxu0 %v4302_v5  ;;  %v1973_v47 = vadd.f32 %v1972_v22, %v1971_v13  ;;  %v2008_v31 = vrot.slane %v2007_v28, 1  ;;  %v1964_v5 = vadd.f32 %v1963_v44, %v1962_v52 }
 0x5de   : > { %3375 = vmatprep.subr.bf16.mxu0 %v4312_v9  ;;  %v2002_v40 = vadd.f32 %v2001_v29, %v2000_v10  ;;  %v1994_v0 = vrot.slane %v1993_v34, 1 }
 0x5df   : > { %2208 = vmatprep.mubr.f32.mxu0 %v1973_v47  ;;  %v2009_v61 = vadd.f32 %v2008_v31, %v2007_v28  ;;  %v1965_v9 = vrot.slane %v1964_v5, 1 }
 0x5e0   : > { %v1995_v49 = vadd.f32 %v1994_v0, %v1993_v34 }
 0x5e1   : > { %3377 = vmatpush3.bf16.msra.mxu0 %v4320_v17  ;;  %2348 = vmatprep.mubr.f32.mxu1 %v2009_v61  ;;  %v1966_v17 = vadd.f32 %v1965_v9, %v1964_v5 }
 0x5e2   : > { %2349 = vmatmul.mubr.f32.vlgmr.msra.gmra.mrb[20].mxu1 %v2002_v40  ;;  %3379 = vmatprep.subr.bf16.mxu0 %v4330_v18  ;;  %v1983_v18 = vrot.slane %v4398_v60, 4 }
 0x5e5   : > { %3381 = vmatpush3.bf16.msra.mxu0 %v4338_v27 }
 0x5e6   : > { %3383 = vmatprep.subr.bf16.mxu0 %v4348_v30 }
 0x5e9   : > { %3385 = vmatpush3.bf16.msra.mxu0 %v4356_v33 }
 0x5ea   : > { %3387 = vmatprep.subr.bf16.mxu0 %v4366_v37 }
 0x5ed   : > { %3389 = vmatpush3.bf16.msra.mxu0 %v4374_v24 }
 0x5ee   : > { %3391 = vmatprep.subr.bf16.mxu0 %v4079_v42  ;;  %v1984_v42 = vadd.f32 %v1983_v18, %v4398_v60 }
 0x5f0   : > { %2209 = vmatmul.mubr.f32.vlgmr.msra.gmra.mrb[6].mxu0 %v1966_v17 }
 0x5f1   : > { %3393 = vmatpush3.bf16.msra.mxu0 %v4090_v45  ;;  %2278 = vmatprep.mubr.f32.mxu0 %v1995_v49  ;;  %v1985_v45 = vrot.slane %v1984_v42, 2 }
 0x5f2   : > { %3395 = vmatprep.subr.bf16.mxu0 %v4092_v46 }
 0x5f3   : > { %v1986_v46 = vadd.f32 %v1985_v45, %v1984_v42 }
 0x5f5   : > { %3397 = vmatpush3.bf16.msra.mxu0 %v4108_v50  ;;  %v1987_v50 = vrot.slane %v1986_v46, 1 }
 0x5f6   : > { %3399 = vmatprep.subr.bf16.mxu0 %v4111_v51 }
 0x5f7   : > { %v1988_v51 = vadd.f32 %v1987_v50, %v1986_v46 }
 0x5f9   : > { %3401 = vmatpush3.bf16.msra.mxu0 %v4120_v54 }
 0x5fa   : > { %3403 = vmatprep.subr.bf16.mxu0 %v4153_v16 }
 0x5fd   : > { %3405 = vmatpush3.bf16.msra.mxu0 %v4161_v14 }
 0x5fe   : > { %3407 = vmatprep.subr.bf16.mxu0 %v4171_v21 }
 0x601   : > { %3409 = vmatpush3.bf16.msra.mxu0 %v4179_v25 }
 0x602   : > { %3411 = vmatprep.subr.bf16.mxu0 %v4198_v32 }
 0x605   : > { %3413 = vmatpush3.bf16.msra.mxu0 %v4211_v36 }
 0x606   : > { %3415 = vmatprep.subr.bf16.mxu0 %v4233_v41  ;;  %v2361_v41 = vsub.s32 0, %v3847_v1 }
 0x609   : > { %3417 = vmatpush3.bf16.msra.mxu0 %v4247_v48 }
 0x60a   : > { %3419 = vmatprep.subr.bf16.mxu0 %v4269_v57 }
 0x60d   : > { %3421 = vmatpush3.bf16.msra.mxu0 %v4283_v62 }
 0x610   : > { %2279 = vmatmul.mubr.f32.vlgmr.msra.gmra.mrb[8].mxu0 %v1988_v51 }
 0x6a3   : > { %v2750_v54 = vpop.f32.mrb[4].mxu0 }
 0x6a4   : > { %v2751_v16 = vpop.f32.mrb[5].mxu0 }
 0x6a5   : > { %v2752_v14 = vadd.f32 %v2751_v16, %v2750_v54 }
 0x6b5   : > { %v2855_v21 = vpop.f32.mrb[20].mxu1 }
 0x6b6   : > { %v2856_v25 = vpop.f32.mrb[21].mxu1 }
 0x6b7   : > { %v2857_v32 = vadd.f32 %v2856_v25, %v2855_v21 }
 0x6c3   : > { %v2785_v27 = vpop.f32.mrb[6].mxu0 }
 0x6c4   : > { %v2786_v36 = vpop.f32.mrb[7].mxu0 }
 0x6c5   : > { %v2787_v30 = vadd.f32 %v2786_v36, %v2785_v27 }
 0x6c7   : > { %v2211_v33 = vadd.f32 %v2787_v30, %v2752_v14 }
 0x6c9   : > { %v2362_v48 = vrot.slane %v2211_v33, %v2361_v41 }
 0x6cb   : > { %v2363_v57 = vsub.f32 %v4378_v19, %v2362_v48  ;;  %v2364_v37 = vsub.f32 %v4382_v12, %v2362_v48  ;;  %v2379_v62 = vsub.f32 %v4380_v43, %v2362_v48  ;;  %v2380_v24 = vsub.f32 %v4390_v53, %v2362_v48 }
 0x6cc   : > { %v2392_v60 = vsub.f32 %v4400_v8, %v2362_v48  ;;  %v2393_v20 = vsub.f32 %v4404_v11, %v2362_v48  ;;  %v2405_v55 = vsub.f32 %v4402_v23, %v2362_v48  ;;  %v2406_v1 = vsub.f32 %v4412_v38, %v2362_v48 }
 0x6cd   : > { %v2354_v19 = vmul.f32 %v2211_v33, %v2211_v33 }
 0x6e3   : > { %v2820_v56 = vpop.f32.mrb[8].mxu0 }
 0x6e4   : > { %v2821_v58 = vpop.f32.mrb[9].mxu0 }
 0x6e5   : > { %v2822_v59 = vadd.f32 %v2821_v58, %v2820_v56 }
 0x6e7   : > { %v2351_v63 = vadd.f32 %v2857_v32, %v2822_v59 }
 0x6e9   : > { %v2355_v12 = vsub.f32 %v2351_v63, %v2354_v19 }
 0x6eb   : > { %v2356_v3 = vmax.f32 %v2355_v12, 0.0 }
 0x6ed   : > { %v2357_v43 = vadd.f32 1e-05, %v2356_v3 }
 0x6ef   : > { %3545 = vrsqrt.f32 %v2357_v43 }
 0x6f9   : > { %v3546_v53 = vpop.eup %3545 }
 0x6fa   : > { %v2368_v8 = vrot.slane %v3546_v53, %v2361_v41 }
 0x6fc   : > { %v2369_v11 = vmul.f32 %v2368_v8, %v2363_v57  ;;  %v2370_v4 = vmul.f32 %v2368_v8, %v2364_v37  ;;  %v2381_v23 = vmul.f32 %v2379_v62, %v2368_v8  ;;  %v2382_v6 = vmul.f32 %v2380_v24, %v2368_v8 }
 0x6fd   : > { %v2394_v38 = vmul.f32 %v2392_v60, %v2368_v8  ;;  %v2395_v7 = vmul.f32 %v2393_v20, %v2368_v8  ;;  %v2407_v13 = vmul.f32 %v2405_v55, %v2368_v8  ;;  %v2408_v26 = vmul.f32 %v2406_v1, %v2368_v8 }
 0x6fe   : > { %v2373_v15 = vmul.f32 0.2, %v2369_v11  ;;  %v2374_v10 = vmul.f32 0.2, %v2370_v4  ;;  %v2385_v39 = vmul.f32 0.2, %v2381_v23 }
 0x6ff   : > { %v2386_v22 = vmul.f32 0.2, %v2382_v6  ;;  %v2398_v28 = vmul.f32 0.2, %v2394_v38  ;;  %v2399_v29 = vmul.f32 0.2, %v2395_v7 }
 0x700   : > { %v2411_v47 = vmul.f32 0.2, %v2407_v13  ;;  %v2412_v31 = vmul.f32 0.2, %v2408_v26  ;;  %vm2371_vm6 = vcmp.gt.f32.partialorder %v2369_v11, 0.0  ;;  %vm2372_vm7 = vcmp.gt.f32.partialorder %v2370_v4, 0.0 }
 0x701   : > { %v2375_v52 = vsel %vm2371_vm6, %v2369_v11, %v2373_v15  ;;  %v2376_v35 = vsel %vm2372_vm7, %v2370_v4, %v2374_v10  ;;  %vm2383_vm8 = vcmp.gt.f32.partialorder %v2381_v23, 0.0  ;;  %vm2384_vm9 = vcmp.gt.f32.partialorder %v2382_v6, 0.0 }
 0x702   : > { %2377 = vst [vmem:[%s4466_s10] sm:$0xff] %v2375_v52  ;;  %2378 = vst [vmem:[%s4466_s10 + $0x8] sm:$0xff] %v2376_v35  ;;  %v2387_v61 = vsel %vm2383_vm8, %v2381_v23, %v2385_v39  ;;  %v2388_v40 = vsel %vm2384_vm9, %v2382_v6, %v2386_v22  ;;  %vm2396_vm10 = vcmp.gt.f32.partialorder %v2394_v38, 0.0  ;;  %vm2397_vm11 = vcmp.gt.f32.partialorder %v2395_v7, 0.0 }
 0x703   : > { %2597 = vst [vmem:[%s4466_s10 + $0x10] sm:$0xff] %v2387_v61  ;;  %2598 = vst [vmem:[%s4466_s10 + $0x18] sm:$0xff] %v2388_v40  ;;  %v2400_v44 = vsel %vm2396_vm10, %v2394_v38, %v2398_v28  ;;  %v2401_v2 = vsel %vm2397_vm11, %v2395_v7, %v2399_v29  ;;  %vm2409_vm12 = vcmp.gt.f32.partialorder %v2407_v13, 0.0  ;;  %vm2410_vm13 = vcmp.gt.f32.partialorder %v2408_v26, 0.0 }
 0x704   : > { %2599 = vst [vmem:[%s4466_s10 + $0x20] sm:$0xff] %v2400_v44  ;;  %2600 = vst [vmem:[%s4466_s10 + $0x28] sm:$0xff] %v2401_v2  ;;  %v2413_v5 = vsel %vm2409_vm12, %v2407_v13, %v2411_v47  ;;  %v2414_v34 = vsel %vm2410_vm13, %v2408_v26, %v2412_v31 }
 0x705   : > { %2601 = vst [vmem:[%s4466_s10 + $0x30] sm:$0xff] %v2413_v5  ;;  %2602 = vst [vmem:[%s4466_s10 + $0x38] sm:$0xff] %v2414_v34 }
 0x706   : > { %3616 = shalt.err (!%p3613_p11)
}
 0x707   : > { %s3617_s22 = scalar_lea.hbm %s4474_s19, 1024  ;;  %s3621_s8 = scalar_lea.hbm %s4534_s7, 2048 }
 0x708   : > { %p3618_p13 = scmp.ne.s32.totalorder %s4474_s19, %s3617_s22  ;;  %p3622_p6 = scmp.lt.u32.totalorder %s4474_s19, %s4534_s7 }
 0x709   : > { %p3623_p9 = scmp.lt.u32.totalorder %s3621_s8, %s3617_s22  ;;  %p3625_p12 = scmp.lt.u32.totalorder %s3617_s22, %s4474_s19 }
 0x70a   : > { %p3619_p0 = pnand %p3618_p13, %p4548_p1 }
 0x70b   : > { %p3624_p10 = por %p3623_p9, %p3622_p6 }
 0x70c   : > { %p3620_p5 = pneg %p3619_p0 }
 0x70d   : > { %p3626_p2 = por %p3625_p12, %p3624_p10 }
 0x70f   : > { %p3627_p3 = pnand %p3626_p2, %p3620_p5 }
 0x711   : > { %3630 = shalt.err (!%p3627_p3)
}
 0x712   : > { %s3683_s10 = smov 128   ;;  %s3684_s28 = smov 8  }
 0x713   : > { %3486 = dma.vmem_to_hbm [thread:$0]  (%p4548_p1), %s4476_s14, 1024, %s4474_s19, %s4486_s16, %s3683_s10, %s3683_s10, %s3684_s28  }
 0x714 PF: > { %p3503_p4 = scmp.ge.s32.totalorder %s3673_s27, 2  ;;  %s2447_s17 = sand.u32 1, %s3661_s24  }
 0x715   : > { %p4549_p7 = scmp.ne.s32.totalorder %s4540_s12, 0  ;;  %s2448_s13 = scalar_lea.sflag [#allocation4], %s2447_s17 }
 0x717   : > { %p3496_p8 = pnand %p3503_p4, %p4549_p7 }
 0x719   : > { %3656 = dma.done.wait (!%p3496_p8), %s2448_s13, 1024  }
 0x71a   : > { %3658 = vsyncadd (!%p3496_p8), %s2448_s13, 4294966272  ;;  %s4550_s18 = sld [smem:[#allocation11_spill]]  ;;  %p19_p11 = scmp.ge.s32.totalorder %s3750_s30, 4  }
 0x71b   : > { %s4551_s24 = smov %s3665_s25  ;;  %s4552_s25 = smov %s3669_s26 }
 0x71c   : > { %s4554_s27 = smov %s3750_s30  ;;  %21 = sbr.rel (!%p19_p11) target bundleno = 5 (0x5), region = 101 }
 0x720   : > { %s4553_s26 = smov %s4550_s18 }
 0x723   :  { %2453 = vsyncpa [#allocation3], 1 }
 0x724   :  { %2455 = vsyncpa [#allocation3 + $0x1], 1 }
 0x725   :  { %2456 = vsyncpa [#allocation6], 1 }
 0x726   :  { %2457 = vsyncpa [#allocation4], 1 }
 0x727   :  { %2459 = vsyncpa [#allocation4 + $0x1], 1 }

</bundles_post_ra>
